<compile_context>
chip_gen: v6e
topology: v6e:2x2x1
jax: 0.10.0
libtpu: 0.0.40
codegen_flags: <defaults>
</compile_context>

<pallas_src>
import functools
import numpy as np
import jax
import jax.numpy as jnp
from jax import lax
from jax.experimental import pallas as pl
from jax.experimental.pallas import tpu as pltpu

NEG_INF = -1e9
LN_EPS = 1e-5


def _layer_norm(x, g, b):
    mu = jnp.mean(x, axis=-1, keepdims=True)
    var = jnp.mean((x - mu) ** 2, axis=-1, keepdims=True)
    return (x - mu) * lax.rsqrt(var + LN_EPS) * g + b


def _gelu_new(x):
    # GPT2 "gelu_new"
    return 0.5 * x * (1.0 + jnp.tanh(0.7978845608028654 * (x + 0.044715 * x * x * x)))


# ---------------------------------------------------------------------------
# Kernel 1: transformer stack.  grid = (B, n_layer); one sequence per step,
# hidden state carried in the output block across the layer axis.
# ---------------------------------------------------------------------------
def gpt_layer_kernel(n_head,
                     len_ref,                     # SMEM (B,) int32 (scalar prefetch)
                     hid_ref,                     # (S, D) f32  (this sequence's rows)
                     ln1_g, ln1_b, attn_w, attn_b, attn_pw, attn_pb,
                     ln2_g, ln2_b, fc_w, fc_b, prj_w, prj_b,
                     lnf_g, lnf_b,
                     h_ref):                      # (S, D) f32 output, layer-resident
    b = pl.program_id(0)
    l = pl.program_id(1)
    n_layers = pl.num_programs(1)

    @pl.when(l == 0)
    def _():
        h_ref[...] = hid_ref[...]

    h = h_ref[...]                                # (S, D) f32
    S, D = h.shape
    hd = D // n_head
    scale = 1.0 / np.sqrt(hd)

    # Per-sequence additive attention bias: causal AND key inside its length.
    ridx = lax.broadcasted_iota(jnp.int32, (S, S), 0)
    cidx = lax.broadcasted_iota(jnp.int32, (S, S), 1)
    allowed = (cidx <= ridx) & (cidx < len_ref[b])
    bias = jnp.where(allowed, 0.0, NEG_INF).astype(jnp.float32)   # (S, S)

    # ---- self-attention block ----
    x = _layer_norm(h, ln1_g[0], ln1_b[0])
    qkv = jnp.dot(x.astype(jnp.bfloat16), attn_w[0],
                  preferred_element_type=jnp.float32) + attn_b[0]
    # fold 1/sqrt(hd) into q once (S*D mults) instead of scaling (S,S) scores
    q = (qkv[:, 0:D] * scale).astype(jnp.bfloat16)
    k = qkv[:, D:2 * D].astype(jnp.bfloat16)
    v = qkv[:, 2 * D:3 * D].astype(jnp.bfloat16)

    ctx_parts = []
    for hh in range(n_head):                      # static, small
        qh = q[:, hh * hd:(hh + 1) * hd]
        kh = k[:, hh * hd:(hh + 1) * hd]
        vh = v[:, hh * hd:(hh + 1) * hd]
        # scores = qh @ kh^T (contract head dim, no explicit transpose)
        s = lax.dot_general(qh, kh, (((1,), (1,)), ((), ())),
                            preferred_element_type=jnp.float32) + bias
        m = jnp.max(s, axis=-1, keepdims=True)
        p = jnp.exp(s - m)
        p = p * pl.reciprocal(jnp.sum(p, axis=-1, keepdims=True), approx=True)
        ctx_parts.append(jnp.dot(p.astype(jnp.bfloat16), vh,
                                 preferred_element_type=jnp.float32))
    # one 128-lane-wide (S, D) context value, no masked partial VMEM stores
    ctx = jnp.concatenate(ctx_parts, axis=-1)

    attn_out = jnp.dot(ctx.astype(jnp.bfloat16), attn_pw[0],
                       preferred_element_type=jnp.float32) + attn_pb[0]
    h = h + attn_out

    # ---- MLP block ----
    x = _layer_norm(h, ln2_g[0], ln2_b[0])
    ff = jnp.dot(x.astype(jnp.bfloat16), fc_w[0],
                 preferred_element_type=jnp.float32) + fc_b[0]
    ff = _gelu_new(ff)
    ff = jnp.dot(ff.astype(jnp.bfloat16), prj_w[0],
                 preferred_element_type=jnp.float32) + prj_b[0]
    h = h + ff

    h_ref[...] = h

    @pl.when(l == n_layers - 1)
    def _():
        h_ref[...] = _layer_norm(h, lnf_g[...], lnf_b[...])


# ---------------------------------------------------------------------------
# Kernel 2: vocab head projection, tiled over a lane-dense vocab axis.
# ---------------------------------------------------------------------------
def vocab_head_kernel(h_ref, head_w_ref, head_b_ref, out_ref):
    out_ref[...] = jnp.dot(h_ref[...].astype(jnp.bfloat16), head_w_ref[...],
                           preferred_element_type=jnp.float32) + head_b_ref[...]


LAYER_WEIGHT_ORDER = ("ln1_g", "ln1_b", "attn_w", "attn_b", "attn_pw", "attn_pb",
                      "ln2_g", "ln2_b", "fc_w", "fc_b", "prj_w", "prj_b")

VMEM_LIMIT = 48 * 1024 * 1024   # explicit; <= ~56 MiB keeps headroom on v7x


def gpt_pretrain_forward(hidden, lengths, params, *, n_layer, n_head, vocab_tile=128):
    """hidden: [B,S,D] f32, lengths: [B] int32. Returns logits [B,S,V] f32."""
    B, S, D = hidden.shape
    V = params["head_w"].shape[-1]
    R = B * S
    hid2d = hidden.reshape(R, D)

    layer_weights = [params[k] for k in LAYER_WEIGHT_ORDER]

    def per_layer_spec(a):
        # (L, x, y) -> block (1, x, y), streamed per layer-grid step
        nd = a.ndim
        return pl.BlockSpec((1,) + a.shape[1:],
                            lambda b, l, lens, _n=nd - 1: (l,) + (0,) * _n)

    kernel1 = functools.partial(gpt_layer_kernel, n_head)

    h_final = pl.pallas_call(
        kernel1,
        out_shape=jax.ShapeDtypeStruct((R, D), jnp.float32),
        grid_spec=pltpu.PrefetchScalarGridSpec(
            num_scalar_prefetch=1,                       # lengths -> SMEM
            grid=(B, n_layer),                           # batch parallel, layers pipelined
            in_specs=[pl.BlockSpec((S, D), lambda b, l, lens: (b, 0))]
                     + [per_layer_spec(w) for w in layer_weights]
                     + [pl.BlockSpec(params["lnf_g"].shape, lambda b, l, lens: (0, 0)),
                        pl.BlockSpec(params["lnf_b"].shape, lambda b, l, lens: (0, 0))],
            out_specs=pl.BlockSpec((S, D), lambda b, l, lens: (b, 0)),
        ),
        compiler_params=pltpu.CompilerParams(
            dimension_semantics=("parallel", "arbitrary"),
            vmem_limit_bytes=VMEM_LIMIT),
    )(lengths, hid2d, *layer_weights, params["lnf_g"], params["lnf_b"])

    TN = min(vocab_tile, V)
    logits = pl.pallas_call(
        vocab_head_kernel,
        out_shape=jax.ShapeDtypeStruct((R, V), jnp.float32),
        grid_spec=pltpu.PrefetchScalarGridSpec(
            num_scalar_prefetch=0,
            grid=(V // TN,),                             # lane-dense vocab tiles
            in_specs=[pl.BlockSpec((R, D), lambda j: (0, 0)),
                      pl.BlockSpec((D, TN), lambda j: (0, j)),
                      pl.BlockSpec((1, TN), lambda j: (0, j))],
            out_specs=pl.BlockSpec((R, TN), lambda j: (0, j)),
        ),
        compiler_params=pltpu.CompilerParams(
            dimension_semantics=("parallel",),
            vmem_limit_bytes=VMEM_LIMIT),
    )(h_final, params["head_w"], params["head_b"])

    return logits.reshape(B, S, V)


# ---------------------------------------------------------------------------
# pure-JAX f32 reference (same math, weights cast bf16 -> f32) for correctness
# ---------------------------------------------------------------------------
def reference_forward(hidden, lengths, params, *, n_layer, n_head):
    B, S, D = hidden.shape
    hd = D // n_head
    scale = 1.0 / np.sqrt(hd)
    causal = jnp.asarray(np.tril(np.ones((S, S), dtype=np.bool_)))
    f32 = lambda a: a.astype(jnp.float32)

    outs = []
    for b in range(B):
        h = hidden[b]
        key_ok = (jnp.arange(S)[None, :] < lengths[b]).astype(jnp.float32)
        pad_add = (1.0 - key_ok) * NEG_INF                                  # (1, S)
        for l in range(n_layer):
            x = _layer_norm(h, f32(params["ln1_g"][l]), f32(params["ln1_b"][l]))
            qkv = x @ f32(params["attn_w"][l]) + f32(params["attn_b"][l])
            q, k, v = qkv[:, :D], qkv[:, D:2 * D], qkv[:, 2 * D:]
            acc = jnp.zeros((S, D), jnp.float32)
            for hh in range(n_head):
                qh = q[:, hh * hd:(hh + 1) * hd]
                kh = k[:, hh * hd:(hh + 1) * hd]
                vh = v[:, hh * hd:(hh + 1) * hd]
                s = (qh @ kh.T) * scale
                s = jnp.where(causal, s, NEG_INF) + pad_add
                p = jax.nn.softmax(s, axis=-1)
                acc = acc + (p @ vh) @ f32(params["attn_pw"][l])[hh * hd:(hh + 1) * hd, :]
            h = h + acc + f32(params["attn_pb"][l])
            x = _layer_norm(h, f32(params["ln2_g"][l]), f32(params["ln2_b"][l]))
            ff = _gelu_new(x @ f32(params["fc_w"][l]) + f32(params["fc_b"][l]))
            h = h + ff @ f32(params["prj_w"][l]) + f32(params["prj_b"][l])
        h = _layer_norm(h, f32(params["lnf_g"]), f32(params["lnf_b"]))
        outs.append(h @ f32(params["head_w"]) + f32(params["head_b"]))
    return jnp.stack(outs, axis=0)


def init_params(key, *, n_layer, d_model, n_head, d_ff, vocab):
    ks = jax.random.split(key, 8)
    std = 0.02
    bf16 = jnp.bfloat16
    p = {
        "ln1_g": jnp.ones((n_layer, 1, d_model), jnp.float32),
        "ln1_b": jnp.zeros((n_layer, 1, d_model), jnp.float32),
        # matmul weights shipped as bf16 (MXU-native, halves weight DMA bytes)
        "attn_w": (std * jax.random.normal(ks[0], (n_layer, d_model, 3 * d_model))).astype(bf16),
        "attn_b": jnp.zeros((n_layer, 1, 3 * d_model), jnp.float32),
        "attn_pw": (std * jax.random.normal(ks[1], (n_layer, d_model, d_model))).astype(bf16),
        "attn_pb": jnp.zeros((n_layer, 1, d_model), jnp.float32),
        "ln2_g": jnp.ones((n_layer, 1, d_model), jnp.float32),
        "ln2_b": jnp.zeros((n_layer, 1, d_model), jnp.float32),
        "fc_w": (std * jax.random.normal(ks[2], (n_layer, d_model, d_ff))).astype(bf16),
        "fc_b": jnp.zeros((n_layer, 1, d_ff), jnp.float32),
        "prj_w": (std * jax.random.normal(ks[3], (n_layer, d_ff, d_model))).astype(bf16),
        "prj_b": jnp.zeros((n_layer, 1, d_model), jnp.float32),
        "lnf_g": jnp.ones((1, d_model), jnp.float32),
        "lnf_b": jnp.zeros((1, d_model), jnp.float32),
        "head_w": (std * jax.random.normal(ks[4], (d_model, vocab))).astype(bf16),
        "head_b": jnp.zeros((1, vocab), jnp.float32),
        "wte": std * jax.random.normal(ks[5], (vocab, d_model), jnp.float32),
        "wpe": std * jax.random.normal(ks[6], (512, d_model), jnp.float32),
    }
    return p


if __name__ == "__main__":
    # small synthetic config (the HF GPT2Config in the module is huge)
    B, S = 2, 8
    D, H, L = 128, 4, 2
    FF = 4 * D
    V = 256

    key = jax.random.PRNGKey(0)
    k_par, k_tok = jax.random.split(key)
    params = init_params(k_par, n_layer=L, d_model=D, n_head=H, d_ff=FF, vocab=V)

    # batch['targets'] and batch['trg_length']
    tokens = jax.random.randint(k_tok, (B, S), 0, V, dtype=jnp.int32)
    lengths = jnp.array([S, S - 3], dtype=jnp.int32)

    # glue kept in JAX: embedding gather + position-embedding add
    word_embed = params["wte"][tokens]                                 # (B,S,D)
    hidden = (word_embed + params["wpe"][:S][None]).astype(jnp.float32)

    out = gpt_pretrain_forward(hidden, lengths, params, n_layer=L, n_head=H)
    out = jax.block_until_ready(out)

    ref = jax.block_until_ready(
        reference_forward(hidden, lengths, params, n_layer=L, n_head=H))

    assert out.shape == (B, S, V)
    # mixed precision (bf16 MXU operands, approx reciprocal) -> loose tolerance
    np.testing.assert_allclose(np.asarray(out), np.asarray(ref), atol=1e-2, rtol=2e-2)
    print("KERNEL_OK")
</pallas_src>

<mosaic_0001>
module attributes {stable_mosaic.version = 11 : i64} {
  func.func @gpt_layer_kernel(%arg0: i32, %arg1: i32, %arg2: memref<2xi32, #tpu.memory_space<smem>>, %arg3: memref<8x128xf32, #tpu.memory_space<vmem>>, %arg4: memref<1x1x128xf32, #tpu.memory_space<vmem>>, %arg5: memref<1x1x128xf32, #tpu.memory_space<vmem>>, %arg6: memref<1x128x384xbf16, #tpu.memory_space<vmem>>, %arg7: memref<1x1x384xf32, #tpu.memory_space<vmem>>, %arg8: memref<1x128x128xbf16, #tpu.memory_space<vmem>>, %arg9: memref<1x1x128xf32, #tpu.memory_space<vmem>>, %arg10: memref<1x1x128xf32, #tpu.memory_space<vmem>>, %arg11: memref<1x1x128xf32, #tpu.memory_space<vmem>>, %arg12: memref<1x128x512xbf16, #tpu.memory_space<vmem>>, %arg13: memref<1x1x512xf32, #tpu.memory_space<vmem>>, %arg14: memref<1x512x128xbf16, #tpu.memory_space<vmem>>, %arg15: memref<1x1x128xf32, #tpu.memory_space<vmem>>, %arg16: memref<1x128xf32, #tpu.memory_space<vmem>>, %arg17: memref<1x128xf32, #tpu.memory_space<vmem>>, %arg18: memref<8x128xf32, #tpu.memory_space<vmem>>) attributes {dimension_semantics = [#tpu.dimension_semantics<parallel>, #tpu.dimension_semantics<arbitrary>], iteration_bounds = array<i64: 2, 2>, scalar_prefetch = 1 : i64, scratch_operands = 0 : i64, tpu.core_type = #tpu.core_type<tc>, window_params = [{transform_indices = @transform_0, window_bounds = array<i64: 8, 128>}, {transform_indices = @transform_1, window_bounds = array<i64: 1, 1, 128>}, {transform_indices = @transform_2, window_bounds = array<i64: 1, 1, 128>}, {transform_indices = @transform_3, window_bounds = array<i64: 1, 128, 384>}, {transform_indices = @transform_4, window_bounds = array<i64: 1, 1, 384>}, {transform_indices = @transform_5, window_bounds = array<i64: 1, 128, 128>}, {transform_indices = @transform_6, window_bounds = array<i64: 1, 1, 128>}, {transform_indices = @transform_7, window_bounds = array<i64: 1, 1, 128>}, {transform_indices = @transform_8, window_bounds = array<i64: 1, 1, 128>}, {transform_indices = @transform_9, window_bounds = array<i64: 1, 128, 512>}, {transform_indices = @transform_10, window_bounds = array<i64: 1, 1, 512>}, {transform_indices = @transform_11, window_bounds = array<i64: 1, 512, 128>}, {transform_indices = @transform_12, window_bounds = array<i64: 1, 1, 128>}, {pipeline_mode = #tpu.pipeline_mode<synchronous>, transform_indices = @transform_13, window_bounds = array<i64: 1, 128>}, {pipeline_mode = #tpu.pipeline_mode<synchronous>, transform_indices = @transform_14, window_bounds = array<i64: 1, 128>}, {transform_indices = @transform_15, window_bounds = array<i64: 8, 128>}]} {
    %c0_i32 = arith.constant 0 : i32
    %0 = arith.cmpi eq, %arg1, %c0_i32 : i32
    %1 = arith.extui %0 : i1 to i32
    %c0_i32_0 = arith.constant 0 : i32
    %2 = arith.cmpi ne, %1, %c0_i32_0 : i32
    scf.if %2 {
      %c0_77 = arith.constant 0 : index
      %c0_78 = arith.constant 0 : index
      %195 = vector.load %arg3[%c0_77, %c0_78] : memref<8x128xf32, #tpu.memory_space<vmem>>, vector<8x128xf32>
      %c0_79 = arith.constant 0 : index
      %c0_80 = arith.constant 0 : index
      %196 = vector.load %arg18[%c0_79, %c0_80] : memref<8x128xf32, #tpu.memory_space<vmem>>, vector<8x128xf32>
      tpu.vector_store %arg18[%c0_79, %c0_80], %195 {strides = array<i32>} : memref<8x128xf32, #tpu.memory_space<vmem>>, vector<8x128xf32>,
    } else {
    }
    %c0 = arith.constant 0 : index
    %c0_1 = arith.constant 0 : index
    %3 = vector.load %arg18[%c0, %c0_1] : memref<8x128xf32, #tpu.memory_space<vmem>>, vector<8x128xf32>
    %4 = tpu.iota {dimensions = array<i32: 0>} : vector<8x8xi32>
    %5 = tpu.iota {dimensions = array<i32: 1>} : vector<8x8xi32>
    %6 = arith.cmpi sle, %5, %4 : vector<8x8xi32>
    %7 = arith.index_cast %arg0 : i32 to index
    %8 = memref.load %arg2[%7] : memref<2xi32, #tpu.memory_space<smem>>
    %9 = vector.broadcast %8 : i32 to vector<8x8xi32>
    %10 = arith.cmpi slt, %5, %9 : vector<8x8xi32>
    %11 = arith.andi %6, %10 : vector<8x8xi1>
    %cst = arith.constant 0.000000e+00 : f32
    %cst_2 = arith.constant -1.000000e+09 : f32
    %12 = vector.broadcast %cst : f32 to vector<8x8xf32>
    %13 = vector.broadcast %cst_2 : f32 to vector<8x8xf32>
    %14 = arith.select %11, %12, %13 : vector<8x8xi1>, vector<8x8xf32>
    %c0_3 = arith.constant 0 : index
    %c0_4 = arith.constant 0 : index
    %c0_5 = arith.constant 0 : index
    %15 = vector.load %arg4[%c0_3, %c0_4, %c0_5] : memref<1x1x128xf32, #tpu.memory_space<vmem>>, vector<1x1x128xf32>
    %16 = vector.shape_cast %15 : vector<1x1x128xf32> to vector<1x128xf32>
    %c0_6 = arith.constant 0 : index
    %c0_7 = arith.constant 0 : index
    %c0_8 = arith.constant 0 : index
    %17 = vector.load %arg5[%c0_6, %c0_7, %c0_8] : memref<1x1x128xf32, #tpu.memory_space<vmem>>, vector<1x1x128xf32>
    %18 = vector.shape_cast %17 : vector<1x1x128xf32> to vector<1x128xf32>
    %cst_9 = arith.constant dense<0.000000e+00> : vector<8xf32>
    %19 = vector.multi_reduction <add>, %3, %cst_9 [1] : vector<8x128xf32> to vector<8xf32>
    %20 = vector.shape_cast %19 : vector<8xf32> to vector<8x1xf32>
    %cst_10 = arith.constant 1.280000e+02 : f32
    %21 = vector.broadcast %cst_10 : f32 to vector<8x1xf32>
    %22 = arith.divf %20, %21 : vector<8x1xf32>
    %23 = vector.broadcast %22 : vector<8x1xf32> to vector<8x128xf32>
    %24 = arith.subf %3, %23 : vector<8x128xf32>
    %25 = arith.mulf %24, %24 : vector<8x128xf32>
    %cst_11 = arith.constant dense<0.000000e+00> : vector<8xf32>
    %26 = vector.multi_reduction <add>, %25, %cst_11 [1] : vector<8x128xf32> to vector<8xf32>
    %27 = vector.shape_cast %26 : vector<8xf32> to vector<8x1xf32>
    %cst_12 = arith.constant 1.280000e+02 : f32
    %28 = vector.broadcast %cst_12 : f32 to vector<8x1xf32>
    %29 = arith.divf %27, %28 : vector<8x1xf32>
    %30 = vector.broadcast %22 : vector<8x1xf32> to vector<8x128xf32>
    %31 = arith.subf %3, %30 : vector<8x128xf32>
    %cst_13 = arith.constant 9.99999974E-6 : f32
    %32 = vector.broadcast %cst_13 : f32 to vector<8x1xf32>
    %33 = arith.addf %29, %32 : vector<8x1xf32>
    %34 = math.rsqrt %33 : vector<8x1xf32>
    %35 = vector.broadcast %34 : vector<8x1xf32> to vector<8x128xf32>
    %36 = arith.mulf %31, %35 : vector<8x128xf32>
    %37 = vector.broadcast %16 : vector<1x128xf32> to vector<8x128xf32>
    %38 = arith.mulf %36, %37 : vector<8x128xf32>
    %39 = vector.broadcast %18 : vector<1x128xf32> to vector<8x128xf32>
    %40 = arith.addf %38, %39 : vector<8x128xf32>
    %41 = arith.truncf %40 : vector<8x128xf32> to vector<8x128xbf16>
    %c0_14 = arith.constant 0 : index
    %c0_15 = arith.constant 0 : index
    %c0_16 = arith.constant 0 : index
    %42 = vector.load %arg6[%c0_14, %c0_15, %c0_16] : memref<1x128x384xbf16, #tpu.memory_space<vmem>>, vector<1x128x384xbf16>
    %43 = vector.shape_cast %42 : vector<1x128x384xbf16> to vector<128x384xbf16>
    %cst_17 = arith.constant dense<0.000000e+00> : vector<8x384xf32>
    %44 = tpu.matmul %41, %43, %cst_17 {dimension_numbers = #tpu.dot_dimension_numbers<[1], [0], [0], [1], [0, 0, 1, 1], [], []>} : vector<8x128xbf16>, vector<128x384xbf16>, vector<8x384xf32> -> vector<8x384xf32>
    %c0_18 = arith.constant 0 : index
    %c0_19 = arith.constant 0 : index
    %c0_20 = arith.constant 0 : index
    %45 = vector.load %arg7[%c0_18, %c0_19, %c0_20] : memref<1x1x384xf32, #tpu.memory_space<vmem>>, vector<1x1x384xf32>
    %46 = vector.shape_cast %45 : vector<1x1x384xf32> to vector<1x384xf32>
    %47 = vector.broadcast %46 : vector<1x384xf32> to vector<8x384xf32>
    %48 = arith.addf %44, %47 : vector<8x384xf32>
    %49 = vector.extract_strided_slice %48 {offsets = [0, 0], sizes = [8, 128], strides = [1, 1]} : vector<8x384xf32> to vector<8x128xf32>
    %cst_21 = arith.constant 0.176776692 : f32
    %50 = vector.broadcast %cst_21 : f32 to vector<8x128xf32>
    %51 = arith.mulf %49, %50 : vector<8x128xf32>
    %52 = arith.truncf %51 : vector<8x128xf32> to vector<8x128xbf16>
    %53 = vector.extract_strided_slice %48 {offsets = [0, 128], sizes = [8, 128], strides = [1, 1]} : vector<8x384xf32> to vector<8x128xf32>
    %54 = arith.truncf %53 : vector<8x128xf32> to vector<8x128xbf16>
    %55 = vector.extract_strided_slice %48 {offsets = [0, 256], sizes = [8, 128], strides = [1, 1]} : vector<8x384xf32> to vector<8x128xf32>
    %56 = arith.truncf %55 : vector<8x128xf32> to vector<8x128xbf16>
    %57 = vector.extract_strided_slice %52 {offsets = [0, 0], sizes = [8, 32], strides = [1, 1]} : vector<8x128xbf16> to vector<8x32xbf16>
    %58 = vector.extract_strided_slice %54 {offsets = [0, 0], sizes = [8, 32], strides = [1, 1]} : vector<8x128xbf16> to vector<8x32xbf16>
    %59 = vector.extract_strided_slice %56 {offsets = [0, 0], sizes = [8, 32], strides = [1, 1]} : vector<8x128xbf16> to vector<8x32xbf16>
    %cst_22 = arith.constant dense<0.000000e+00> : vector<8x8xf32>
    %60 = tpu.matmul %57, %58, %cst_22 {dimension_numbers = #tpu.dot_dimension_numbers<[1], [1], [0], [0], [0, 0, 1, 0], [], []>} : vector<8x32xbf16>, vector<8x32xbf16>, vector<8x8xf32> -> vector<8x8xf32>
    %61 = arith.addf %60, %14 : vector<8x8xf32>
    %cst_23 = arith.constant dense<0xFF800000> : vector<8xf32>
    %62 = vector.multi_reduction <maximumf>, %61, %cst_23 [1] : vector<8x8xf32> to vector<8xf32>
    %63 = vector.shape_cast %62 : vector<8xf32> to vector<8x1xf32>
    %64 = vector.broadcast %63 : vector<8x1xf32> to vector<8x8xf32>
    %65 = arith.subf %61, %64 : vector<8x8xf32>
    %66 = math.exp %65 : vector<8x8xf32>
    %cst_24 = arith.constant dense<0.000000e+00> : vector<8xf32>
    %67 = vector.multi_reduction <add>, %66, %cst_24 [1] : vector<8x8xf32> to vector<8xf32>
    %68 = vector.shape_cast %67 : vector<8xf32> to vector<8x1xf32>
    %69 = tpu.reciprocal %68 {approx = true} : vector<8x1xf32> -> vector<8x1xf32>
    %70 = vector.broadcast %69 : vector<8x1xf32> to vector<8x8xf32>
    %71 = arith.mulf %66, %70 : vector<8x8xf32>
    %72 = arith.truncf %71 : vector<8x8xf32> to vector<8x8xbf16>
    %cst_25 = arith.constant dense<0.000000e+00> : vector<8x32xf32>
    %73 = tpu.matmul %72, %59, %cst_25 {dimension_numbers = #tpu.dot_dimension_numbers<[1], [0], [0], [1], [0, 0, 1, 1], [], []>} : vector<8x8xbf16>, vector<8x32xbf16>, vector<8x32xf32> -> vector<8x32xf32>
    %74 = vector.extract_strided_slice %52 {offsets = [0, 32], sizes = [8, 32], strides = [1, 1]} : vector<8x128xbf16> to vector<8x32xbf16>
    %75 = vector.extract_strided_slice %54 {offsets = [0, 32], sizes = [8, 32], strides = [1, 1]} : vector<8x128xbf16> to vector<8x32xbf16>
    %76 = vector.extract_strided_slice %56 {offsets = [0, 32], sizes = [8, 32], strides = [1, 1]} : vector<8x128xbf16> to vector<8x32xbf16>
    %cst_26 = arith.constant dense<0.000000e+00> : vector<8x8xf32>
    %77 = tpu.matmul %74, %75, %cst_26 {dimension_numbers = #tpu.dot_dimension_numbers<[1], [1], [0], [0], [0, 0, 1, 0], [], []>} : vector<8x32xbf16>, vector<8x32xbf16>, vector<8x8xf32> -> vector<8x8xf32>
    %78 = arith.addf %77, %14 : vector<8x8xf32>
    %cst_27 = arith.constant dense<0xFF800000> : vector<8xf32>
    %79 = vector.multi_reduction <maximumf>, %78, %cst_27 [1] : vector<8x8xf32> to vector<8xf32>
    %80 = vector.shape_cast %79 : vector<8xf32> to vector<8x1xf32>
    %81 = vector.broadcast %80 : vector<8x1xf32> to vector<8x8xf32>
    %82 = arith.subf %78, %81 : vector<8x8xf32>
    %83 = math.exp %82 : vector<8x8xf32>
    %cst_28 = arith.constant dense<0.000000e+00> : vector<8xf32>
    %84 = vector.multi_reduction <add>, %83, %cst_28 [1] : vector<8x8xf32> to vector<8xf32>
    %85 = vector.shape_cast %84 : vector<8xf32> to vector<8x1xf32>
    %86 = tpu.reciprocal %85 {approx = true} : vector<8x1xf32> -> vector<8x1xf32>
    %87 = vector.broadcast %86 : vector<8x1xf32> to vector<8x8xf32>
    %88 = arith.mulf %83, %87 : vector<8x8xf32>
    %89 = arith.truncf %88 : vector<8x8xf32> to vector<8x8xbf16>
    %cst_29 = arith.constant dense<0.000000e+00> : vector<8x32xf32>
    %90 = tpu.matmul %89, %76, %cst_29 {dimension_numbers = #tpu.dot_dimension_numbers<[1], [0], [0], [1], [0, 0, 1, 1], [], []>} : vector<8x8xbf16>, vector<8x32xbf16>, vector<8x32xf32> -> vector<8x32xf32>
    %91 = vector.extract_strided_slice %52 {offsets = [0, 64], sizes = [8, 32], strides = [1, 1]} : vector<8x128xbf16> to vector<8x32xbf16>
    %92 = vector.extract_strided_slice %54 {offsets = [0, 64], sizes = [8, 32], strides = [1, 1]} : vector<8x128xbf16> to vector<8x32xbf16>
    %93 = vector.extract_strided_slice %56 {offsets = [0, 64], sizes = [8, 32], strides = [1, 1]} : vector<8x128xbf16> to vector<8x32xbf16>
    %cst_30 = arith.constant dense<0.000000e+00> : vector<8x8xf32>
    %94 = tpu.matmul %91, %92, %cst_30 {dimension_numbers = #tpu.dot_dimension_numbers<[1], [1], [0], [0], [0, 0, 1, 0], [], []>} : vector<8x32xbf16>, vector<8x32xbf16>, vector<8x8xf32> -> vector<8x8xf32>
    %95 = arith.addf %94, %14 : vector<8x8xf32>
    %cst_31 = arith.constant dense<0xFF800000> : vector<8xf32>
    %96 = vector.multi_reduction <maximumf>, %95, %cst_31 [1] : vector<8x8xf32> to vector<8xf32>
    %97 = vector.shape_cast %96 : vector<8xf32> to vector<8x1xf32>
    %98 = vector.broadcast %97 : vector<8x1xf32> to vector<8x8xf32>
    %99 = arith.subf %95, %98 : vector<8x8xf32>
    %100 = math.exp %99 : vector<8x8xf32>
    %cst_32 = arith.constant dense<0.000000e+00> : vector<8xf32>
    %101 = vector.multi_reduction <add>, %100, %cst_32 [1] : vector<8x8xf32> to vector<8xf32>
    %102 = vector.shape_cast %101 : vector<8xf32> to vector<8x1xf32>
    %103 = tpu.reciprocal %102 {approx = true} : vector<8x1xf32> -> vector<8x1xf32>
    %104 = vector.broadcast %103 : vector<8x1xf32> to vector<8x8xf32>
    %105 = arith.mulf %100, %104 : vector<8x8xf32>
    %106 = arith.truncf %105 : vector<8x8xf32> to vector<8x8xbf16>
    %cst_33 = arith.constant dense<0.000000e+00> : vector<8x32xf32>
    %107 = tpu.matmul %106, %93, %cst_33 {dimension_numbers = #tpu.dot_dimension_numbers<[1], [0], [0], [1], [0, 0, 1, 1], [], []>} : vector<8x8xbf16>, vector<8x32xbf16>, vector<8x32xf32> -> vector<8x32xf32>
    %108 = vector.extract_strided_slice %52 {offsets = [0, 96], sizes = [8, 32], strides = [1, 1]} : vector<8x128xbf16> to vector<8x32xbf16>
    %109 = vector.extract_strided_slice %54 {offsets = [0, 96], sizes = [8, 32], strides = [1, 1]} : vector<8x128xbf16> to vector<8x32xbf16>
    %110 = vector.extract_strided_slice %56 {offsets = [0, 96], sizes = [8, 32], strides = [1, 1]} : vector<8x128xbf16> to vector<8x32xbf16>
    %cst_34 = arith.constant dense<0.000000e+00> : vector<8x8xf32>
    %111 = tpu.matmul %108, %109, %cst_34 {dimension_numbers = #tpu.dot_dimension_numbers<[1], [1], [0], [0], [0, 0, 1, 0], [], []>} : vector<8x32xbf16>, vector<8x32xbf16>, vector<8x8xf32> -> vector<8x8xf32>
    %112 = arith.addf %111, %14 : vector<8x8xf32>
    %cst_35 = arith.constant dense<0xFF800000> : vector<8xf32>
    %113 = vector.multi_reduction <maximumf>, %112, %cst_35 [1] : vector<8x8xf32> to vector<8xf32>
    %114 = vector.shape_cast %113 : vector<8xf32> to vector<8x1xf32>
    %115 = vector.broadcast %114 : vector<8x1xf32> to vector<8x8xf32>
    %116 = arith.subf %112, %115 : vector<8x8xf32>
    %117 = math.exp %116 : vector<8x8xf32>
    %cst_36 = arith.constant dense<0.000000e+00> : vector<8xf32>
    %118 = vector.multi_reduction <add>, %117, %cst_36 [1] : vector<8x8xf32> to vector<8xf32>
    %119 = vector.shape_cast %118 : vector<8xf32> to vector<8x1xf32>
    %120 = tpu.reciprocal %119 {approx = true} : vector<8x1xf32> -> vector<8x1xf32>
    %121 = vector.broadcast %120 : vector<8x1xf32> to vector<8x8xf32>
    %122 = arith.mulf %117, %121 : vector<8x8xf32>
    %123 = arith.truncf %122 : vector<8x8xf32> to vector<8x8xbf16>
    %cst_37 = arith.constant dense<0.000000e+00> : vector<8x32xf32>
    %124 = tpu.matmul %123, %110, %cst_37 {dimension_numbers = #tpu.dot_dimension_numbers<[1], [0], [0], [1], [0, 0, 1, 1], [], []>} : vector<8x8xbf16>, vector<8x32xbf16>, vector<8x32xf32> -> vector<8x32xf32>
    %125 = tpu.concatenate %73, %90, %107, %124 in 1 : vector<8x32xf32>, vector<8x32xf32>, vector<8x32xf32>, vector<8x32xf32> -> vector<8x128xf32>
    %126 = arith.truncf %125 : vector<8x128xf32> to vector<8x128xbf16>
    %c0_38 = arith.constant 0 : index
    %c0_39 = arith.constant 0 : index
    %c0_40 = arith.constant 0 : index
    %127 = vector.load %arg8[%c0_38, %c0_39, %c0_40] : memref<1x128x128xbf16, #tpu.memory_space<vmem>>, vector<1x128x128xbf16>
    %128 = vector.shape_cast %127 : vector<1x128x128xbf16> to vector<128x128xbf16>
    %cst_41 = arith.constant dense<0.000000e+00> : vector<8x128xf32>
    %129 = tpu.matmul %126, %128, %cst_41 {dimension_numbers = #tpu.dot_dimension_numbers<[1], [0], [0], [1], [0, 0, 1, 1], [], []>} : vector<8x128xbf16>, vector<128x128xbf16>, vector<8x128xf32> -> vector<8x128xf32>
    %c0_42 = arith.constant 0 : index
    %c0_43 = arith.constant 0 : index
    %c0_44 = arith.constant 0 : index
    %130 = vector.load %arg9[%c0_42, %c0_43, %c0_44] : memref<1x1x128xf32, #tpu.memory_space<vmem>>, vector<1x1x128xf32>
    %131 = vector.shape_cast %130 : vector<1x1x128xf32> to vector<1x128xf32>
    %132 = vector.broadcast %131 : vector<1x128xf32> to vector<8x128xf32>
    %133 = arith.addf %129, %132 : vector<8x128xf32>
    %134 = arith.addf %3, %133 : vector<8x128xf32>
    %c0_45 = arith.constant 0 : index
    %c0_46 = arith.constant 0 : index
    %c0_47 = arith.constant 0 : index
    %135 = vector.load %arg10[%c0_45, %c0_46, %c0_47] : memref<1x1x128xf32, #tpu.memory_space<vmem>>, vector<1x1x128xf32>
    %136 = vector.shape_cast %135 : vector<1x1x128xf32> to vector<1x128xf32>
    %c0_48 = arith.constant 0 : index
    %c0_49 = arith.constant 0 : index
    %c0_50 = arith.constant 0 : index
    %137 = vector.load %arg11[%c0_48, %c0_49, %c0_50] : memref<1x1x128xf32, #tpu.memory_space<vmem>>, vector<1x1x128xf32>
    %138 = vector.shape_cast %137 : vector<1x1x128xf32> to vector<1x128xf32>
    %cst_51 = arith.constant dense<0.000000e+00> : vector<8xf32>
    %139 = vector.multi_reduction <add>, %134, %cst_51 [1] : vector<8x128xf32> to vector<8xf32>
    %140 = vector.shape_cast %139 : vector<8xf32> to vector<8x1xf32>
    %cst_52 = arith.constant 1.280000e+02 : f32
    %141 = vector.broadcast %cst_52 : f32 to vector<8x1xf32>
    %142 = arith.divf %140, %141 : vector<8x1xf32>
    %143 = vector.broadcast %142 : vector<8x1xf32> to vector<8x128xf32>
    %144 = arith.subf %134, %143 : vector<8x128xf32>
    %145 = arith.mulf %144, %144 : vector<8x128xf32>
    %cst_53 = arith.constant dense<0.000000e+00> : vector<8xf32>
    %146 = vector.multi_reduction <add>, %145, %cst_53 [1] : vector<8x128xf32> to vector<8xf32>
    %147 = vector.shape_cast %146 : vector<8xf32> to vector<8x1xf32>
    %cst_54 = arith.constant 1.280000e+02 : f32
    %148 = vector.broadcast %cst_54 : f32 to vector<8x1xf32>
    %149 = arith.divf %147, %148 : vector<8x1xf32>
    %150 = vector.broadcast %142 : vector<8x1xf32> to vector<8x128xf32>
    %151 = arith.subf %134, %150 : vector<8x128xf32>
    %cst_55 = arith.constant 9.99999974E-6 : f32
    %152 = vector.broadcast %cst_55 : f32 to vector<8x1xf32>
    %153 = arith.addf %149, %152 : vector<8x1xf32>
    %154 = math.rsqrt %153 : vector<8x1xf32>
    %155 = vector.broadcast %154 : vector<8x1xf32> to vector<8x128xf32>
    %156 = arith.mulf %151, %155 : vector<8x128xf32>
    %157 = vector.broadcast %136 : vector<1x128xf32> to vector<8x128xf32>
    %158 = arith.mulf %156, %157 : vector<8x128xf32>
    %159 = vector.broadcast %138 : vector<1x128xf32> to vector<8x128xf32>
    %160 = arith.addf %158, %159 : vector<8x128xf32>
    %161 = arith.truncf %160 : vector<8x128xf32> to vector<8x128xbf16>
    %c0_56 = arith.constant 0 : index
    %c0_57 = arith.constant 0 : index
    %c0_58 = arith.constant 0 : index
    %162 = vector.load %arg12[%c0_56, %c0_57, %c0_58] : memref<1x128x512xbf16, #tpu.memory_space<vmem>>, vector<1x128x512xbf16>
    %163 = vector.shape_cast %162 : vector<1x128x512xbf16> to vector<128x512xbf16>
    %cst_59 = arith.constant dense<0.000000e+00> : vector<8x512xf32>
    %164 = tpu.matmul %161, %163, %cst_59 {dimension_numbers = #tpu.dot_dimension_numbers<[1], [0], [0], [1], [0, 0, 1, 1], [], []>} : vector<8x128xbf16>, vector<128x512xbf16>, vector<8x512xf32> -> vector<8x512xf32>
    %c0_60 = arith.constant 0 : index
    %c0_61 = arith.constant 0 : index
    %c0_62 = arith.constant 0 : index
    %165 = vector.load %arg13[%c0_60, %c0_61, %c0_62] : memref<1x1x512xf32, #tpu.memory_space<vmem>>, vector<1x1x512xf32>
    %166 = vector.shape_cast %165 : vector<1x1x512xf32> to vector<1x512xf32>
    %167 = vector.broadcast %166 : vector<1x512xf32> to vector<8x512xf32>
    %168 = arith.addf %164, %167 : vector<8x512xf32>
    %cst_63 = arith.constant 5.000000e-01 : f32
    %169 = vector.broadcast %cst_63 : f32 to vector<8x512xf32>
    %170 = arith.mulf %169, %168 : vector<8x512xf32>
    %cst_64 = arith.constant 4.471500e-02 : f32
    %171 = vector.broadcast %cst_64 : f32 to vector<8x512xf32>
    %172 = arith.mulf %171, %168 : vector<8x512xf32>
    %173 = arith.mulf %172, %168 : vector<8x512xf32>
    %174 = arith.mulf %173, %168 : vector<8x512xf32>
    %175 = arith.addf %168, %174 : vector<8x512xf32>
    %cst_65 = arith.constant 0.797884583 : f32
    %176 = vector.broadcast %cst_65 : f32 to vector<8x512xf32>
    %177 = arith.mulf %176, %175 : vector<8x512xf32>
    %178 = math.tanh %177 : vector<8x512xf32>
    %cst_66 = arith.constant 1.000000e+00 : f32
    %179 = vector.broadcast %cst_66 : f32 to vector<8x512xf32>
    %180 = arith.addf %179, %178 : vector<8x512xf32>
    %181 = arith.mulf %170, %180 : vector<8x512xf32>
    %182 = arith.truncf %181 : vector<8x512xf32> to vector<8x512xbf16>
    %c0_67 = arith.constant 0 : index
    %c0_68 = arith.constant 0 : index
    %c0_69 = arith.constant 0 : index
    %183 = vector.load %arg14[%c0_67, %c0_68, %c0_69] : memref<1x512x128xbf16, #tpu.memory_space<vmem>>, vector<1x512x128xbf16>
    %184 = vector.shape_cast %183 : vector<1x512x128xbf16> to vector<512x128xbf16>
    %cst_70 = arith.constant dense<0.000000e+00> : vector<8x128xf32>
    %185 = tpu.matmul %182, %184, %cst_70 {dimension_numbers = #tpu.dot_dimension_numbers<[1], [0], [0], [1], [0, 0, 1, 1], [], []>} : vector<8x512xbf16>, vector<512x128xbf16>, vector<8x128xf32> -> vector<8x128xf32>
    %c0_71 = arith.constant 0 : index
    %c0_72 = arith.constant 0 : index
    %c0_73 = arith.constant 0 : index
    %186 = vector.load %arg15[%c0_71, %c0_72, %c0_73] : memref<1x1x128xf32, #tpu.memory_space<vmem>>, vector<1x1x128xf32>
    %187 = vector.shape_cast %186 : vector<1x1x128xf32> to vector<1x128xf32>
    %188 = vector.broadcast %187 : vector<1x128xf32> to vector<8x128xf32>
    %189 = arith.addf %185, %188 : vector<8x128xf32>
    %190 = arith.addf %134, %189 : vector<8x128xf32>
    %c0_74 = arith.constant 0 : index
    %c0_75 = arith.constant 0 : index
    %191 = vector.load %arg18[%c0_74, %c0_75] : memref<8x128xf32, #tpu.memory_space<vmem>>, vector<8x128xf32>
    tpu.vector_store %arg18[%c0_74, %c0_75], %190 {strides = array<i32>} : memref<8x128xf32, #tpu.memory_space<vmem>>, vector<8x128xf32>,
    %c1_i32 = arith.constant 1 : i32
    %192 = arith.cmpi eq, %arg1, %c1_i32 : i32
    %193 = arith.extui %192 : i1 to i32
    %c0_i32_76 = arith.constant 0 : i32
    %194 = arith.cmpi ne, %193, %c0_i32_76 : i32
    scf.if %194 {
      %c0_77 = arith.constant 0 : index
      %c0_78 = arith.constant 0 : index
      %195 = vector.load %arg16[%c0_77, %c0_78] : memref<1x128xf32, #tpu.memory_space<vmem>>, vector<1x128xf32>
      %c0_79 = arith.constant 0 : index
      %c0_80 = arith.constant 0 : index
      %196 = vector.load %arg17[%c0_79, %c0_80] : memref<1x128xf32, #tpu.memory_space<vmem>>, vector<1x128xf32>
      %cst_81 = arith.constant dense<0.000000e+00> : vector<8xf32>
      %197 = vector.multi_reduction <add>, %190, %cst_81 [1] : vector<8x128xf32> to vector<8xf32>
      %198 = vector.shape_cast %197 : vector<8xf32> to vector<8x1xf32>
      %cst_82 = arith.constant 1.280000e+02 : f32
      %199 = vector.broadcast %cst_82 : f32 to vector<8x1xf32>
      %200 = arith.divf %198, %199 : vector<8x1xf32>
      %201 = vector.broadcast %200 : vector<8x1xf32> to vector<8x128xf32>
      %202 = arith.subf %190, %201 : vector<8x128xf32>
      %203 = arith.mulf %202, %202 : vector<8x128xf32>
      %cst_83 = arith.constant dense<0.000000e+00> : vector<8xf32>
      %204 = vector.multi_reduction <add>, %203, %cst_83 [1] : vector<8x128xf32> to vector<8xf32>
      %205 = vector.shape_cast %204 : vector<8xf32> to vector<8x1xf32>
      %cst_84 = arith.constant 1.280000e+02 : f32
      %206 = vector.broadcast %cst_84 : f32 to vector<8x1xf32>
      %207 = arith.divf %205, %206 : vector<8x1xf32>
      %208 = vector.broadcast %200 : vector<8x1xf32> to vector<8x128xf32>
      %209 = arith.subf %190, %208 : vector<8x128xf32>
      %cst_85 = arith.constant 9.99999974E-6 : f32
      %210 = vector.broadcast %cst_85 : f32 to vector<8x1xf32>
      %211 = arith.addf %207, %210 : vector<8x1xf32>
      %212 = math.rsqrt %211 : vector<8x1xf32>
      %213 = vector.broadcast %212 : vector<8x1xf32> to vector<8x128xf32>
      %214 = arith.mulf %209, %213 : vector<8x128xf32>
      %215 = vector.broadcast %195 : vector<1x128xf32> to vector<8x128xf32>
      %216 = arith.mulf %214, %215 : vector<8x128xf32>
      %217 = vector.broadcast %196 : vector<1x128xf32> to vector<8x128xf32>
      %218 = arith.addf %216, %217 : vector<8x128xf32>
      %c0_86 = arith.constant 0 : index
      %c0_87 = arith.constant 0 : index
      %219 = vector.load %arg18[%c0_86, %c0_87] : memref<8x128xf32, #tpu.memory_space<vmem>>, vector<8x128xf32>
      tpu.vector_store %arg18[%c0_86, %c0_87], %218 {strides = array<i32>} : memref<8x128xf32, #tpu.memory_space<vmem>>, vector<8x128xf32>,
    } else {
    }
    return
  }
  func.func @transform_0(%arg0: i32, %arg1: i32, %arg2: memref<2xi32, #tpu.memory_space<smem>>) -> (i32, i32) {
    %c0_i32 = arith.constant 0 : i32
    %c0_i32_0 = arith.constant 0 : i32
    return %arg0, %c0_i32 : i32, i32
  }
  func.func @transform_1(%arg0: i32, %arg1: i32, %arg2: memref<2xi32, #tpu.memory_space<smem>>) -> (i32, i32, i32) {
    %c0_i32 = arith.constant 0 : i32
    %c0_i32_0 = arith.constant 0 : i32
    %c0_i32_1 = arith.constant 0 : i32
    return %arg1, %c0_i32, %c0_i32_0 : i32, i32, i32
  }
  func.func @transform_2(%arg0: i32, %arg1: i32, %arg2: memref<2xi32, #tpu.memory_space<smem>>) -> (i32, i32, i32) {
    %c0_i32 = arith.constant 0 : i32
    %c0_i32_0 = arith.constant 0 : i32
    %c0_i32_1 = arith.constant 0 : i32
    return %arg1, %c0_i32, %c0_i32_0 : i32, i32, i32
  }
  func.func @transform_3(%arg0: i32, %arg1: i32, %arg2: memref<2xi32, #tpu.memory_space<smem>>) -> (i32, i32, i32) {
    %c0_i32 = arith.constant 0 : i32
    %c0_i32_0 = arith.constant 0 : i32
    %c0_i32_1 = arith.constant 0 : i32
    return %arg1, %c0_i32, %c0_i32_0 : i32, i32, i32
  }
  func.func @transform_4(%arg0: i32, %arg1: i32, %arg2: memref<2xi32, #tpu.memory_space<smem>>) -> (i32, i32, i32) {
    %c0_i32 = arith.constant 0 : i32
    %c0_i32_0 = arith.constant 0 : i32
    %c0_i32_1 = arith.constant 0 : i32
    return %arg1, %c0_i32, %c0_i32_0 : i32, i32, i32
  }
  func.func @transform_5(%arg0: i32, %arg1: i32, %arg2: memref<2xi32, #tpu.memory_space<smem>>) -> (i32, i32, i32) {
    %c0_i32 = arith.constant 0 : i32
    %c0_i32_0 = arith.constant 0 : i32
    %c0_i32_1 = arith.constant 0 : i32
    return %arg1, %c0_i32, %c0_i32_0 : i32, i32, i32
  }
  func.func @transform_6(%arg0: i32, %arg1: i32, %arg2: memref<2xi32, #tpu.memory_space<smem>>) -> (i32, i32, i32) {
    %c0_i32 = arith.constant 0 : i32
    %c0_i32_0 = arith.constant 0 : i32
    %c0_i32_1 = arith.constant 0 : i32
    return %arg1, %c0_i32, %c0_i32_0 : i32, i32, i32
  }
  func.func @transform_7(%arg0: i32, %arg1: i32, %arg2: memref<2xi32, #tpu.memory_space<smem>>) -> (i32, i32, i32) {
    %c0_i32 = arith.constant 0 : i32
    %c0_i32_0 = arith.constant 0 : i32
    %c0_i32_1 = arith.constant 0 : i32
    return %arg1, %c0_i32, %c0_i32_0 : i32, i32, i32
  }
  func.func @transform_8(%arg0: i32, %arg1: i32, %arg2: memref<2xi32, #tpu.memory_space<smem>>) -> (i32, i32, i32) {
    %c0_i32 = arith.constant 0 : i32
    %c0_i32_0 = arith.constant 0 : i32
    %c0_i32_1 = arith.constant 0 : i32
    return %arg1, %c0_i32, %c0_i32_0 : i32, i32, i32
  }
  func.func @transform_9(%arg0: i32, %arg1: i32, %arg2: memref<2xi32, #tpu.memory_space<smem>>) -> (i32, i32, i32) {
    %c0_i32 = arith.constant 0 : i32
    %c0_i32_0 = arith.constant 0 : i32
    %c0_i32_1 = arith.constant 0 : i32
    return %arg1, %c0_i32, %c0_i32_0 : i32, i32, i32
  }
  func.func @transform_10(%arg0: i32, %arg1: i32, %arg2: memref<2xi32, #tpu.memory_space<smem>>) -> (i32, i32, i32) {
    %c0_i32 = arith.constant 0 : i32
    %c0_i32_0 = arith.constant 0 : i32
    %c0_i32_1 = arith.constant 0 : i32
    return %arg1, %c0_i32, %c0_i32_0 : i32, i32, i32
  }
  func.func @transform_11(%arg0: i32, %arg1: i32, %arg2: memref<2xi32, #tpu.memory_space<smem>>) -> (i32, i32, i32) {
    %c0_i32 = arith.constant 0 : i32
    %c0_i32_0 = arith.constant 0 : i32
    %c0_i32_1 = arith.constant 0 : i32
    return %arg1, %c0_i32, %c0_i32_0 : i32, i32, i32
  }
  func.func @transform_12(%arg0: i32, %arg1: i32, %arg2: memref<2xi32, #tpu.memory_space<smem>>) -> (i32, i32, i32) {
    %c0_i32 = arith.constant 0 : i32
    %c0_i32_0 = arith.constant 0 : i32
    %c0_i32_1 = arith.constant 0 : i32
    return %arg1, %c0_i32, %c0_i32_0 : i32, i32, i32
  }
  func.func @transform_13(%arg0: i32, %arg1: i32, %arg2: memref<2xi32, #tpu.memory_space<smem>>) -> (i32, i32) {
    %c0_i32 = arith.constant 0 : i32
    %c0_i32_0 = arith.constant 0 : i32
    %c0_i32_1 = arith.constant 0 : i32
    return %c0_i32, %c0_i32_0 : i32, i32
  }
  func.func @transform_14(%arg0: i32, %arg1: i32, %arg2: memref<2xi32, #tpu.memory_space<smem>>) -> (i32, i32) {
    %c0_i32 = arith.constant 0 : i32
    %c0_i32_0 = arith.constant 0 : i32
    %c0_i32_1 = arith.constant 0 : i32
    return %c0_i32, %c0_i32_0 : i32, i32
  }
  func.func @transform_15(%arg0: i32, %arg1: i32, %arg2: memref<2xi32, #tpu.memory_space<smem>>) -> (i32, i32) {
    %c0_i32 = arith.constant 0 : i32
    %c0_i32_0 = arith.constant 0 : i32
    return %arg0, %c0_i32 : i32, i32
  }
}

</mosaic_0001>

<bundles_post_ra>
// kernel: tpu_custom_call.1
= control target key start
LH: loop header
LB: loop body
LE: loop exit
PB: predicated region body
PF: predicated region fallthrough
CT: control target
= control target key end

     0   :  { %s3814_s21 = smov [#allocation3]   ;;  %s4606_s0 = inlined_call_operand.hbm [shape: s32[2], index: 0, kind: input, shape index: {}]   ;;  %s4607_s1 = inlined_call_operand.hbm [shape: f32[16,128], index: 1, kind: input, shape index: {}]   ;;  %s4608_s2 = inlined_call_operand.vmem [shape: f32[2,1,128], index: 2, kind: input, shape index: {}]   ;;  %s4609_s3 = inlined_call_operand.hbm [shape: f32[2,1,128], index: 3, kind: input, shape index: {}]   ;;  %s4610_s4 = inlined_call_operand.hbm [shape: bf16[2,128,384], index: 4, kind: input, shape index: {}]   ;;  %s4611_s5 = inlined_call_operand.vmem [shape: f32[2,1,384], index: 5, kind: input, shape index: {}]   ;;  %s4612_s6 = inlined_call_operand.hbm [shape: bf16[2,128,128], index: 6, kind: input, shape index: {}]   ;;  %s4613_s7 = inlined_call_operand.hbm [shape: f32[2,1,128], index: 7, kind: input, shape index: {}]   ;;  %s4614_s8 = inlined_call_operand.hbm [shape: f32[2,1,128], index: 8, kind: input, shape index: {}]   ;;  %s4615_s9 = inlined_call_operand.hbm [shape: f32[2,1,128], index: 9, kind: input, shape index: {}]   ;;  %s4616_s10 = inlined_call_operand.hbm [shape: bf16[2,128,512], index: 10, kind: input, shape index: {}]   ;;  %s4617_s11 = inlined_call_operand.vmem [shape: f32[2,1,512], index: 11, kind: input, shape index: {}]   ;;  %s4618_s12 = inlined_call_operand.hbm [shape: bf16[2,512,128], index: 12, kind: input, shape index: {}]   ;;  %s4619_s13 = inlined_call_operand.vmem [shape: f32[2,1,128], index: 13, kind: input, shape index: {}]   ;;  %s4620_s14 = inlined_call_operand.vmem [shape: f32[1,128], index: 14, kind: input, shape index: {}]   ;;  %s4621_s15 = inlined_call_operand.vmem [shape: f32[1,128], index: 15, kind: input, shape index: {}]   ;;  %s4622_s16 = inlined_call_operand.hbm [shape: f32[16,128], index: 16, kind: output, shape index: {}]  }
   0x1   :  { %4646 = sst [smem:[#allocation41_spill]] %s4606_s0 }
   0x2   :  { %4647 = sst [smem:[#allocation42_spill]] %s4607_s1 }
   0x3   :  { %4648 = sst [smem:[#allocation43_spill]] %s4608_s2 }
   0x4   :  { %4649 = sst [smem:[#allocation44_spill]] %s4609_s3 }
   0x5   :  { %4650 = sst [smem:[#allocation45_spill]] %s4610_s4 }
   0x6   :  { %4651 = sst [smem:[#allocation46_spill]] %s4611_s5 }
   0x7   :  { %4652 = sst [smem:[#allocation47_spill]] %s4612_s6 }
   0x8   :  { %4653 = sst [smem:[#allocation48_spill]] %s4613_s7 }
   0x9   :  { %4654 = sst [smem:[#allocation49_spill]] %s4614_s8 }
   0xa   :  { %4655 = sst [smem:[#allocation50_spill]] %s4615_s9 }
   0xb   :  { %4656 = sst [smem:[#allocation51_spill]] %s4616_s10 }
   0xc   :  { %4657 = sst [smem:[#allocation52_spill]] %s4617_s11 }
   0xd   :  { %4658 = sst [smem:[#allocation53_spill]] %s4618_s12 }
   0xe   :  { %4659 = sst [smem:[#allocation54_spill]] %s4619_s13 }
   0xf   :  { %4660 = sst [smem:[#allocation55_spill]] %s4620_s14 }
  0x10   :  { %4661 = sst [smem:[#allocation56_spill]] %s4621_s15 }
  0x11   :  { %4662 = sst [smem:[#allocation57_spill]] %s4622_s16 }
  0x12   :  { %s4663_s5 = sld [smem:[#allocation41_spill]] }
  0x18   :  { %22 = dma.hbm_to_smem %s4663_s5, 16, %s3814_s21, [#allocation2] }
  0x19   :  { %3744 = dma.done.wait [#allocation2], 16 }
  0x1a   :  { %3745 = vsyncadd [#allocation2], 4294967280 }
  0x1b   :  { %24 = sfence }
  0x1c   :  { %25 = vsyncpa [#allocation5], 0 }
  0x1d   :  { %27 = vsyncpa [#allocation5 + $0x1], 0 }
  0x1e   :  { %28 = vsyncpa [#allocation8], 0 }
  0x1f   :  { %30 = vsyncpa [#allocation8 + $0x1], 0 }
  0x20   :  { %31 = vsyncpa [#allocation11], 0 }
  0x21   :  { %33 = vsyncpa [#allocation11 + $0x1], 0 }
  0x22   :  { %34 = vsyncpa [#allocation14], 0 }
  0x23   :  { %36 = vsyncpa [#allocation14 + $0x1], 0 }
  0x24   :  { %37 = vsyncpa [#allocation17], 0 }
  0x25   :  { %39 = vsyncpa [#allocation17 + $0x1], 0 }
  0x26   :  { %40 = vsyncpa [#allocation6], 0 }
  0x27   :  { %42 = vsyncpa [#allocation6 + $0x1], 0  ;;  %s3926_s24 = smov 0   ;;  %s3928_s25 = smov 0  }
  0x28   :  { %s3930_s5 = smov 0   ;;  %s3932_s26 = smov 0  }
  0x29   :  { %s3934_s27 = smov 0   ;;  %s3936_s28 = smov 0  }
  0x2a   :  { %s3938_s29 = smov 0   ;;  %s3940_s30 = smov 0  }
  0x2b   :  { %s3942_s0 = smov 0   ;;  %s3944_s17 = smov 0  }
  0x2c   :  { %s3946_s18 = smov 0  }
  0x2d LB: > { %4664 = sst [smem:[#allocation27_spill]] %s3776_s25  ;;  %p75_p0 = scmp.eq.s32.totalorder %s3812_s18, 0  ;;  %s3812_s18 = sphi %s3946_s18, %s48_s18   ;;  %s3808_s17 = sphi %s3944_s17, %s4738_s17   ;;  %s3804_s0 = sphi %s3942_s0, %s4737_s0   ;;  %s3800_s30 = sphi %s3940_s30, %s4736_s30   ;;  %s3796_s29 = sphi %s3938_s29, %s4735_s29   ;;  %s3792_s28 = sphi %s3936_s28, %s4734_s28   ;;  %s3788_s27 = sphi %s3934_s27, %s4740_s27   ;;  %s3784_s26 = sphi %s3932_s26, %s4739_s26   ;;  %s3780_s5 = sphi %s3930_s5, %s4732_s5   ;;  %s3776_s25 = sphi %s3928_s25, %s4731_s25   ;;  %s3772_s24 = sphi %s3926_s24, %s4730_s24  }
  0x2e   : > { %4665 = sst [smem:[#allocation28_spill]] %s3780_s5  ;;  %p126_p1 = scmp.ne.s32.totalorder %s3780_s5, %s3776_s25 }
  0x2f   : > { %4666 = sst [smem:[#allocation29_spill]] %s3784_s26  ;;  %p4633_p2 = scmp.lt.s32.totalorder %s3812_s18, 4 }
  0x30   : > { %4667 = sst [smem:[#allocation30_spill]] %s3792_s28  ;;  %s3986_s19 = sand.u32 1, %s3812_s18  }
  0x31   : > { %4668 = sst [smem:[#allocation31_spill]] %s3796_s29  ;;  %p128_p3 = por %p126_p1, %p75_p0 }
  0x32   : > { %4669 = sst [smem:[#allocation32_spill]] %s3800_s30  ;;  %s3991_s20 = sand.u32 1, %s3780_s5  }
  0x33   : > { %4670 = sst [smem:[#allocation33_spill]] %s3804_s0  ;;  %s3994_s21 = sshll.u32 %s3804_s0, 4 }
  0x34   : > { %4671 = sst [smem:[#allocation34_spill]] %s3808_s17  ;;  %s517_s15 = scalar_lea.vmem [#allocation7], %s3991_s20 }
  0x35   : > { %s4672_s3 = sld [smem:[#allocation44_spill]]  ;;  %s524_s14 = sshll.u32 %s517_s15, 4  ;;  %s525_s14 = int_to_ptr.vmem [resolvable:$true] %s524_s14 }
  0x36   : > { %p4003_p4 = pnand %p4633_p2, %p128_p3  ;;  %p2810_p5 = scmp.ge.s32.totalorder %s3812_s18, 1 }
  0x37   : > { %p684_p6 = scmp.lt.s32.totalorder %s3812_s18, 5  ;;  %s4626_s11 = scalar_lea.sflag [#allocation8], %s3986_s19 }
  0x38   : > { %p4012_p7 = pneg %p4003_p4  ;;  %s3435_s22 = scalar_lea.vmem %s525_s14, 16 }
  0x39   : > { %p3436_p8 = scmp.ne.s32.totalorder %s525_s14, %s3435_s22  ;;  %s3815_s15 = smov [#allocation7]  }
  0x3a   : > { %s3440_s23 = sshll.u32 %s3815_s15, 4  ;;  %s3441_s23 = int_to_ptr.vmem [resolvable:$false] %s3440_s23 }
  0x3b   : > { %s522_s16 = scalar_lea.hbm %s4672_s3, %s3994_s21  ;;  %p3438_p9 = pnand %p3436_p8, %p4012_p7 }
  0x3c   : > { %s3442_s3 = scalar_lea.vmem %s3441_s23, 32  ;;  %p3443_p11 = scmp.lt.s32.totalorder %s525_s14, %s3441_s23 }
  0x3d   : > { %p3439_p10 = pneg %p3438_p9  ;;  %p3444_p12 = scmp.lt.s32.totalorder %s3442_s3, %s3435_s22 }
  0x3f   : > { %p3445_p13 = por %p3444_p12, %p3443_p11 }
  0x41   : > { %p3446_p1 = pnand %p3445_p13, %p3439_p10 }
  0x43   : > { %3449 = shalt.err (!%p3446_p1)
}
  0x44   : > { %3134 = dma.hbm_to_vmem [thread:$0]  (!%p4003_p4), %s522_s16, 16, %s525_s14, %s4626_s11  }
  0x45   : > { %p4026_p3 = pnand %p2810_p5, %p684_p6  ;;  %s2798_s3 = sshll.u32 %s3991_s20, 6 }
  0x46   : > { %s2935_s22 = sshll.u32 %s3804_s0, 10  ;;  %s4677_s6 = sld [smem:[#allocation47_spill]] }
  0x47   : > { %s4675_s15 = scalar_select %p4026_p3, 1, 0 }
  0x48   : > { %s563_s9 = scalar_lea.vmem [#allocation10], %s2798_s3  ;;  %s4631_s4 = scalar_lea.sflag [#allocation11], %s3986_s19 }
  0x49   : > { %4676 = sst [smem:[#allocation35_spill]] %s4675_s15  ;;  %s570_s7 = sshll.u32 %s563_s9, 4  ;;  %s571_s7 = int_to_ptr.vmem [resolvable:$true] %s570_s7 }
  0x4a   : > { %s3463_s1 = scalar_lea.vmem %s571_s7, 1024  ;;  %s3816_s14 = smov [#allocation10]  }
  0x4b   : > { %p3464_p8 = scmp.ne.s32.totalorder %s571_s7, %s3463_s1  ;;  %s3468_s16 = sshll.u32 %s3816_s14, 4  ;;  %s3469_s16 = int_to_ptr.vmem [resolvable:$false] %s3468_s16 }
  0x4c   : > { %s569_s29 = scalar_lea.hbm %s4677_s6, %s2935_s22  ;;  %s3470_s11 = scalar_lea.vmem %s3469_s16, 2048 }
  0x4d   : > { %p3466_p9 = pnand %p3464_p8, %p4012_p7  ;;  %p3471_p5 = scmp.lt.s32.totalorder %s571_s7, %s3469_s16 }
  0x4e   : > { %p3472_p6 = scmp.lt.s32.totalorder %s3470_s11, %s3463_s1 }
  0x4f   : > { %p3467_p10 = pneg %p3466_p9 }
  0x50   : > { %p3473_p11 = por %p3472_p6, %p3471_p5 }
  0x52   : > { %p3474_p12 = pnand %p3473_p11, %p3467_p10 }
  0x54   : > { %3477 = shalt.err (!%p3474_p12)
}
  0x55   : > { %s4629_s2 = smov 64   ;;  %s4630_s9 = smov 4  }
  0x56   : > { %3140 = dma.hbm_to_vmem [thread:$0]  (!%p4003_p4), %s569_s29, 1024, %s571_s7, %s4631_s4, %s4629_s2, %s4629_s2, %s4630_s9  }
  0x57   : > { %s4678_s8 = sld [smem:[#allocation49_spill]]  ;;  %s600_s11 = scalar_lea.vmem [#allocation13], %s3991_s20 }
  0x58   : > { %s607_s23 = sshll.u32 %s600_s11, 4  ;;  %s4632_s14 = scalar_lea.sflag [#allocation14], %s3986_s19  ;;  %s608_s23 = int_to_ptr.vmem [resolvable:$true] %s607_s23 }
  0x59   : > { %s3491_s16 = scalar_lea.vmem %s608_s23, 16  ;;  %s3819_s6 = smov [#allocation13]  }
  0x5a   : > { %p3492_p13 = scmp.ne.s32.totalorder %s608_s23, %s3491_s16  ;;  %s3496_s15 = sshll.u32 %s3819_s6, 4  ;;  %s3497_s15 = int_to_ptr.vmem [resolvable:$false] %s3496_s15 }
  0x5b   : > { %s3498_s25 = scalar_lea.vmem %s3497_s15, 32  ;;  %p3499_p9 = scmp.lt.s32.totalorder %s608_s23, %s3497_s15 }
  0x5c   : > { %p3494_p1 = pnand %p3492_p13, %p4012_p7  ;;  %p3500_p10 = scmp.lt.s32.totalorder %s3498_s25, %s3491_s16 }
  0x5d   : > { %s605_s1 = scalar_lea.hbm %s4678_s8, %s3994_s21 }
  0x5e   : > { %p3495_p8 = pneg %p3494_p1  ;;  %p3501_p5 = por %p3500_p10, %p3499_p9 }
  0x60   : > { %p3502_p6 = pnand %p3501_p5, %p3495_p8 }
  0x62   : > { %3505 = shalt.err (!%p3502_p6)
}
  0x63   : > { %3146 = dma.hbm_to_vmem [thread:$0]  (!%p4003_p4), %s605_s1, 16, %s608_s23, %s4632_s14  }
  0x64   : > { %s2804_s7 = sshll.u32 %s3991_s20, 8  ;;  %s2936_s29 = sshll.u32 %s3804_s0, 12 }
  0x65   : > { %s4679_s10 = sld [smem:[#allocation51_spill]]  ;;  %s635_s15 = scalar_lea.vmem [#allocation16], %s2804_s7 }
  0x66   : > { %s642_s25 = sshll.u32 %s635_s15, 4  ;;  %s4634_s11 = scalar_lea.sflag [#allocation17], %s3986_s19  ;;  %s643_s25 = int_to_ptr.vmem [resolvable:$true] %s642_s25 }
  0x67   : > { %s3519_s16 = scalar_lea.vmem %s643_s25, 4096  ;;  %s3820_s2 = smov [#allocation16]  }
  0x68   : > { %p3520_p11 = scmp.ne.s32.totalorder %s643_s25, %s3519_s16  ;;  %s3524_s9 = sshll.u32 %s3820_s2, 4  ;;  %s3525_s9 = int_to_ptr.vmem [resolvable:$false] %s3524_s9 }
  0x69   : > { %s3526_s4 = scalar_lea.vmem %s3525_s9, 8192  ;;  %p3527_p1 = scmp.lt.s32.totalorder %s643_s25, %s3525_s9 }
  0x6a   : > { %p3522_p12 = pnand %p3520_p11, %p4012_p7  ;;  %p3528_p8 = scmp.lt.s32.totalorder %s3526_s4, %s3519_s16 }
  0x6b   : > { %s641_s22 = scalar_lea.hbm %s4679_s10, %s2936_s29 }
  0x6c   : > { %p3523_p13 = pneg %p3522_p12  ;;  %p3529_p9 = por %p3528_p8, %p3527_p1 }
  0x6e   : > { %p3530_p10 = pnand %p3529_p9, %p3523_p13 }
  0x70   : > { %3533 = shalt.err (!%p3530_p10)
}
  0x71   : > { %s3821_s1 = smov 256   ;;  %s3822_s2 = smov 16  }
  0x72   : > { %3152 = dma.hbm_to_vmem [thread:$0]  (!%p4003_p4), %s641_s22, 4096, %s643_s25, %s4634_s11, %s3821_s1, %s3821_s1, %s3822_s2  }
  0x73   : > { %s119_s4 = sadd.s32 1, %s3780_s5  ;;  %s4680_s12 = sld [smem:[#allocation53_spill]] }
  0x74   : > { %s4075_s6 = scalar_lea.vmem [#allocation18], %s2804_s7  ;;  %s4079_s16 = sadd.s32 4294967295, %s3812_s18  }
  0x75   : > { %s2791_s14 = sadd.s32 4294967294, %s3812_s18   ;;  %s57_s8 = sadd.s32 1, %s3804_s0 }
  0x76   : > { %s60_s22 = sadd.s32 1, %s3808_s17  ;;  %s4681_s25 = sld [smem:[#allocation27_spill]] }
  0x77   : > { %p58_p5 = scmp.ge.s32.totalorder %s57_s8, 2  ;;  %p74_p6 = scmp.ne.s32.totalorder %s3792_s28, %s3788_s27 }
  0x78   : > { %p4635_p11 = scmp.ne.s32.totalorder %s3788_s27, %s3784_s26  ;;  %p81_p13 = scmp.eq.s32.totalorder %s4079_s16, 0 }
  0x79   : > { %s4073_s3 = scalar_lea.hbm %s4680_s12, %s2936_s29  ;;  %s67_s29 = sadd.s32 1, %s3792_s28 }
  0x7a   : > { %s4742_s8 = smov (%p58_p5, %s57_s8), 0  ;;  %s4744_s22 = smov (!%p58_p5, %s60_s22), %s3808_s17 }
  0x7b   : > { %4682 = sst [smem:[#allocation36_spill]] %s4742_s8  ;;  %p4097_p12 = por %p75_p0, %p74_p6 }
  0x7c   : > { %p62_p1 = scmp.ge.s32.totalorder %s4744_s22, 2  ;;  %s116_s1 = ssub.s32 %s3804_s0, %s4742_s8 }
  0x7d   : > { %p4107_p8 = por %p81_p13, %p4635_p11  ;;  %p117_p9 = scmp.eq.s32.totalorder %s116_s1, 0 }
  0x7e   : > { %s4746_s22 = smov (%p62_p1, %s4744_s22), 0  ;;  %p132_p0 = scmp.ne.s32.totalorder %s4681_s25, %s3772_s24 }
  0x7f   : > { %s4684_s2 = scalar_select %p4107_p8, 1, 0 }
  0x80   : > { %4685 = sst [smem:[#allocation37_spill]] %s4746_s22  ;;  %s64_s23 = ssub.s32 %s3808_s17, %s4746_s22 }
  0x81   : > { %s4114_s9 = scalar_select %p117_p9, %s3780_s5, %s119_s4  }
  0x82   : > { %p65_p10 = scmp.eq.s32.totalorder %s64_s23, 0  ;;  %p458_p5 = scmp.eq.s32.totalorder %s4079_s16, 3 }
  0x83   : > { %4686 = sst [smem:[#allocation38_spill]] %s4114_s9  ;;  %p4121_p2 = por %p132_p0, %p81_p13 }
  0x84   : > { %p464_p11 = scmp.eq.s32.totalorder %s2791_s14, 3  ;;  %p4131_p1 = por %p458_p5, %p74_p6 }
  0x85   : > { %s4126_s15 = scalar_select %p65_p10, %s3792_s28, %s67_s29  }
  0x86   : > { %p4690_p9 = scmp.ne.s32.totalorder %s3788_s27, %s3784_s26  ;;  %s490_s24 = sand.u32 1, %s3792_s28  }
  0x87   : > { %4688 = sst [smem:[#allocation39_spill]] %s4126_s15  ;;  %s2795_s25 = sshll.u32 %s3808_s17, 7 }
  0x88   : > { %p4138_p8 = por %p464_p11, %p4690_p9  ;;  %s2794_s23 = sshll.u32 %s490_s24, 3 }
  0x89   : > { %s4693_s22 = sld [smem:[#allocation42_spill]]  ;;  %s494_s14 = scalar_lea.vmem [#allocation4], %s2794_s23 }
  0x8a   : > { %s4691_s4 = scalar_select %p4138_p8, 1, 0 }
  0x8b   : > { %s501_s29 = sshll.u32 %s494_s14, 4  ;;  %p4694_p13 = scmp.lt.s32.totalorder %s3812_s18, 4  ;;  %s502_s29 = int_to_ptr.vmem [resolvable:$true] %s501_s29 }
  0x8c   : > { %4692 = sst [smem:[#allocation40_spill]] %s4691_s4  ;;  %s3104_s9 = smul.u32 192, %s3991_s20 }
  0x8d   : > { %p4151_p6 = pnand %p4694_p13, %p4097_p12  ;;  %s3105_s5 = smul.u32 3072, %s3804_s0 }
  0x8e   : > { %s491_s4 = scalar_lea.sflag [#allocation5], %s490_s24  ;;  %s3547_s17 = scalar_lea.vmem %s502_s29, 128 }
  0x8f   : > { %s499_s8 = scalar_lea.hbm %s4693_s22, %s2795_s25  ;;  %p3536_p11 = pneg %p4151_p6 }
  0x90   : > { %p3548_p0 = scmp.ne.s32.totalorder %s502_s29, %s3547_s17  ;;  %s3823_s10 = smov [#allocation4]  }
  0x91   : > { %s3552_s12 = sshll.u32 %s3823_s10, 4  ;;  %s3553_s12 = int_to_ptr.vmem [resolvable:$false] %s3552_s12 }
  0x92   : > { %p3550_p10 = pnand %p3548_p0, %p3536_p11  ;;  %s3554_s22 = scalar_lea.vmem %s3553_s12, 256 }
  0x93   : > { %p3555_p9 = scmp.lt.s32.totalorder %s502_s29, %s3553_s12  ;;  %p3556_p12 = scmp.lt.s32.totalorder %s3554_s22, %s3547_s17 }
  0x94   : > { %p3551_p5 = pneg %p3550_p10 }
  0x95   : > { %p3557_p13 = por %p3556_p12, %p3555_p9 }
  0x97   : > { %p3558_p8 = pnand %p3557_p13, %p3551_p5 }
  0x99   : > { %3561 = shalt.err (!%p3558_p8)
}
  0x9a   : > { %3131 = dma.hbm_to_vmem [thread:$0]  (!%p4151_p6), %s499_s8, 128, %s502_s29, %s491_s4  }
  0x9b   : > { %s4696_s25 = sld [smem:[#allocation45_spill]]  ;;  %s535_s14 = scalar_lea.vmem [#allocation9], %s3104_s9 }
  0x9c   : > { %s542_s0 = sshll.u32 %s535_s14, 4  ;;  %s3824_s17 = smov [#allocation9]   ;;  %s543_s0 = int_to_ptr.vmem [resolvable:$true] %s542_s0 }
  0x9d   : > { %s3575_s28 = scalar_lea.vmem %s543_s0, 3072  ;;  %s3580_s10 = sshll.u32 %s3824_s17, 4  ;;  %s3581_s10 = int_to_ptr.vmem [resolvable:$false] %s3580_s10 }
  0x9e   : > { %p3576_p11 = scmp.ne.s32.totalorder %s543_s0, %s3575_s28  ;;  %s3582_s12 = scalar_lea.vmem %s3581_s10, 6144 }
  0x9f   : > { %p3583_p8 = scmp.lt.s32.totalorder %s543_s0, %s3581_s10  ;;  %p3584_p5 = scmp.lt.s32.totalorder %s3582_s12, %s3575_s28 }
  0xa0   : > { %p3578_p0 = pnand %p3576_p11, %p4012_p7 }
  0xa1   : > { %s541_s23 = scalar_lea.hbm %s4696_s25, %s3105_s5  ;;  %p3585_p9 = por %p3584_p5, %p3583_p8 }
  0xa2   : > { %p3579_p10 = pneg %p3578_p0 }
  0xa4   : > { %p3586_p6 = pnand %p3585_p9, %p3579_p10 }
  0xa6   : > { %3589 = shalt.err (!%p3586_p6)
}
  0xa7   : > { %s3825_s8 = smov 192   ;;  %s3826_s5 = smov 12  }
  0xa8   : > { %s4697_s15 = scalar_lea.sflag [#allocation8], %s3986_s19  ;;  %s4698_s29 = sld [smem:[#allocation48_spill]] }
  0xa9   : > { %3137 = dma.hbm_to_vmem [thread:$0]  (!%p4003_p4), %s541_s23, 3072, %s543_s0, %s4697_s15, %s3825_s8, %s3825_s8, %s3826_s5  }
  0xaa   : > { %s583_s7 = scalar_lea.vmem [#allocation12], %s3991_s20  ;;  %s4699_s14 = sld [smem:[#allocation50_spill]] }
  0xab   : > { %s590_s28 = sshll.u32 %s583_s7, 4  ;;  %s3827_s12 = smov [#allocation12]   ;;  %s591_s28 = int_to_ptr.vmem [resolvable:$true] %s590_s28 }
  0xac   : > { %s3603_s10 = scalar_lea.vmem %s591_s28, 16  ;;  %s3608_s26 = sshll.u32 %s3827_s12, 4  ;;  %s3609_s26 = int_to_ptr.vmem [resolvable:$false] %s3608_s26 }
  0xad   : > { %p3604_p12 = scmp.ne.s32.totalorder %s591_s28, %s3603_s10  ;;  %s3610_s0 = scalar_lea.vmem %s3609_s26, 32 }
  0xae   : > { %s588_s22 = scalar_lea.hbm %s4698_s29, %s3994_s21  ;;  %p3611_p0 = scmp.lt.s32.totalorder %s591_s28, %s3609_s26 }
  0xaf   : > { %p3606_p13 = pnand %p3604_p12, %p4012_p7  ;;  %p3612_p10 = scmp.lt.s32.totalorder %s3610_s0, %s3603_s10 }
  0xb0   : > { %s622_s17 = scalar_lea.hbm %s4699_s14, %s3994_s21 }
  0xb1   : > { %p3607_p11 = pneg %p3606_p13  ;;  %p3613_p8 = por %p3612_p10, %p3611_p0 }
  0xb3   : > { %p3614_p5 = pnand %p3613_p8, %p3607_p11 }
  0xb5   : > { %3617 = shalt.err (!%p3614_p5)
}
  0xb6   : > { %s4700_s23 = scalar_lea.sflag [#allocation11], %s3986_s19  ;;  %s4701_s8 = sshll.u32 %s4075_s6, 4  ;;  %s4187_s8 = int_to_ptr.vmem [resolvable:$true] %s4701_s8 }
  0xb7   : > { %3143 = dma.hbm_to_vmem [thread:$0]  (!%p4003_p4), %s588_s22, 16, %s591_s28, %s4700_s23  }
  0xb8   : > { %s617_s5 = scalar_lea.vmem [#allocation15], %s3991_s20  ;;  %s3828_s26 = smov [#allocation15]  }
  0xb9   : > { %s624_s15 = sshll.u32 %s617_s5, 4  ;;  %s3636_s4 = sshll.u32 %s3828_s26, 4  ;;  %s625_s15 = int_to_ptr.vmem [resolvable:$true] %s624_s15  ;;  %s3637_s4 = int_to_ptr.vmem [resolvable:$false] %s3636_s4 }
  0xba   : > { %s3631_s9 = scalar_lea.vmem %s625_s15, 16  ;;  %s3638_s29 = scalar_lea.vmem %s3637_s4, 32 }
  0xbb   : > { %p3632_p9 = scmp.ne.s32.totalorder %s625_s15, %s3631_s9  ;;  %p3639_p13 = scmp.lt.s32.totalorder %s625_s15, %s3637_s4 }
  0xbc   : > { %p3640_p11 = scmp.lt.s32.totalorder %s3638_s29, %s3631_s9 }
  0xbd   : > { %p3634_p6 = pnand %p3632_p9, %p4012_p7 }
  0xbe   : > { %p3641_p0 = por %p3640_p11, %p3639_p13 }
  0xbf   : > { %p3635_p12 = pneg %p3634_p6 }
  0xc1   : > { %p3642_p10 = pnand %p3641_p0, %p3635_p12 }
  0xc3   : > { %3645 = shalt.err (!%p3642_p10)
}
  0xc4   : > { %s4702_s20 = scalar_lea.sflag [#allocation14], %s3986_s19  ;;  %s3659_s7 = scalar_lea.vmem %s4187_s8, 4096 }
  0xc5   : > { %3149 = dma.hbm_to_vmem [thread:$0]  (!%p4003_p4), %s622_s17, 16, %s625_s15, %s4702_s20  }
  0xc6   : > { %p3660_p8 = scmp.ne.s32.totalorder %s4187_s8, %s3659_s7  ;;  %s3829_s28 = smov [#allocation18]  }
  0xc7   : > { %s3664_s24 = sshll.u32 %s3829_s28, 4  ;;  %s3665_s24 = int_to_ptr.vmem [resolvable:$false] %s3664_s24 }
  0xc8   : > { %p3662_p5 = pnand %p3660_p8, %p4012_p7  ;;  %s3666_s25 = scalar_lea.vmem %s3665_s24, 8192 }
  0xc9   : > { %p3667_p6 = scmp.lt.s32.totalorder %s4187_s8, %s3665_s24  ;;  %p3668_p12 = scmp.lt.s32.totalorder %s3666_s25, %s3659_s7 }
  0xca   : > { %p3663_p9 = pneg %p3662_p5 }
  0xcb   : > { %p3669_p13 = por %p3668_p12, %p3667_p6 }
  0xcd   : > { %p3670_p11 = pnand %p3669_p13, %p3663_p9 }
  0xcf   : > { %3673 = shalt.err (!%p3670_p11)
}
  0xd0   : > { %s4703_s21 = smov 4   ;;  %s4704_s10 = smov 64  }
  0xd1   : > { %s4705_s17 = scalar_lea.sflag [#allocation17], %s3986_s19  ;;  %688 = sbr.rel (%p4026_p3) target bundleno = 3391 (0xd3f), region = 80 }
  0xd2   : > { %3155 = dma.hbm_to_vmem [thread:$0]  (!%p4003_p4), %s4073_s3, 4096, %s4187_s8, %s4705_s17, %s4704_s10, %s4704_s10, %s4703_s21  }
  0xd3   : > { %s4218_s12 = sand.u32 (!%p4026_p3), 1, %s3788_s27   ;;  %p4707_p7 = scmp.ne.s32.totalorder (!%p4026_p3), %s4684_s2, 0 }
  0xd4   : > { %s4645_s0 = sshll.u32 (!%p4026_p3), %s4218_s12, 3  ;;  %s691_s30 = scalar_lea.sflag (!%p4026_p3), [#allocation5], %s4218_s12 }
  0xd5   : > { %s4224_s23 = scalar_lea.vmem (!%p4026_p3), [#allocation4], %s4645_s0 }
  0xd6   : > { %3747 = dma.done.wait (%p4707_p7), %s691_s30, 128  }
  0xd7   : > { %3749 = vsyncadd (%p4707_p7), %s691_s30, 4294967168  ;;  %s4708_s19 = sld [smem:[#allocation27_spill]]  ;;  %s699_s3 = sand.u32 1, %s4079_s16  }
  0xd8   : > { %s700_s5 = scalar_lea.sflag [#allocation8], %s699_s3 }
  0xdd   : > { %s4232_s8 = sand.u32 1, %s4708_s19  }
  0xde   : > { %3751 = dma.done.wait (%p4121_p2), %s700_s5, 3088  }
  0xdf   : > { %3753 = vsyncadd (%p4121_p2), %s700_s5, 4294964208  ;;  %s3106_s9 = smul.u32 192, %s4232_s8  ;;  %s2812_s2 = sshll.u32 %s4232_s8, 6 }
  0xe0   : > { %s717_s4 = scalar_lea.sflag [#allocation11], %s699_s3  ;;  %s4243_s29 = scalar_lea.vmem [#allocation10], %s2812_s2 }
  0xe1   : > { %s4241_s26 = scalar_lea.vmem [#allocation9], %s3106_s9 }
  0xe2   : > { %3755 = dma.done.wait (%p4121_p2), %s717_s4, 1040  }
  0xe3   : > { %3757 = vsyncadd (%p4121_p2), %s717_s4, 4294966256  ;;  %s734_s20 = scalar_lea.sflag [#allocation14], %s699_s3 }
  0xe4   : > { %3759 = dma.done.wait (%p4121_p2), %s734_s20, 32  }
  0xe5   : > { %3761 = vsyncadd (%p4121_p2), %s734_s20, 4294967264  ;;  %s2813_s22 = sshll.u32 %s4232_s8, 8  ;;  %s750_s28 = scalar_lea.sflag [#allocation17], %s699_s3 }
  0xe6   : > { %s4257_s24 = scalar_lea.vmem [#allocation16], %s2813_s22 }
  0xe7   : > { %3763 = dma.done.wait (%p4121_p2), %s750_s28, 8192  }
  0xe8   : > { %3765 = vsyncadd (%p4121_p2), %s750_s28, 4294959104  ;;  %s4709_s25 = sld [smem:[#allocation31_spill]]  ;;  %s4287_s10 = scalar_lea.vmem [#allocation18], %s2813_s22 }
  0xe9   : > { %s4710_s13 = sld [smem:[#allocation43_spill]]  ;;  %s4714_s17 = sshll.u32 %s4218_s12, 3 }
  0xea   : > { %s4711_s11 = sld [smem:[#allocation54_spill]] }
  0xeb   : > { %s4712_s28 = sld [smem:[#allocation46_spill]] }
  0xec   : > { %s4713_s15 = sld [smem:[#allocation52_spill]] }
  0xee   : > { %p859_p4 = scmp.lt.s32.totalorder %s4709_s25, 1  ;;  %p2817_p2 = scmp.ne.s32.totalorder %s4709_s25, 0 }
  0xf0   : > { %s4265_s21 = scalar_select %p859_p4, %s4709_s25, 1 }
  0xf1   : > { %877 = sbr.rel (%p2817_p2) target bundleno = 248 (0xf8), region = 120 }
  0xf2   : > { %s861_s30 = scalar_lea.vmem %s4710_s13, %s4265_s21  ;;  %s3107_s19 = smul.u32 3, %s4265_s21 }
  0xf3   : > { %s2816_s3 = sshll.u32 %s4265_s21, 2  ;;  %s872_s2 = scalar_lea.vmem %s4711_s11, %s4265_s21 }
  0xf4   : > { %s4280_s7 = scalar_lea.vmem %s4712_s28, %s3107_s19  ;;  %s4285_s0 = scalar_lea.vmem %s4713_s15, %s2816_s3 }
  0xf5   : > { %s4291_s13 = scalar_lea.vmem [#allocation19], %s4714_s17 }
  0xf6   : > { %v878_v0 = vld [vmem:[%s4224_s23] sm:$0xff] }
  0xf7   : > { %879 = vst [vmem:[%s4291_s13] sm:$0xff] %v878_v0 }
  0xf8 PF: > { %v3264_v2 = vld [vmem:[%s4241_s26 + $0xac] ss:$12 sps:$4 sm:$0xff]   ;;  %v3266_v3 = vld [vmem:[%s4241_s26 + $0xa8] ss:$12 sps:$4 sm:$0xff]   ;;  %v3830_v4 = vmov 0.0   ;;  %v3831_v23 = vmov 0   ;;  %v881_v42 = vlaneseq }
  0xf9   : > { %3016 = vmatprep.subr.bf16.mxu1 %v3830_v4  ;;  %v3267_v5 = vld [vmem:[%s4241_s26 + $0xb0] ss:$12 sps:$4 sm:$0xff]   ;;  %v3268_v6 = vld [vmem:[%s4241_s26 + $0x94] ss:$12 sps:$4 sm:$0xff]   ;;  %1097 = vmatprep.subr.bf16.mxu0 %v3264_v2  ;;  %v3271_v8 = vld [vmem:[%s4241_s26 + $0x98] ss:$12 sps:$4 sm:$0xff]  }
  0xfa   : > { %v3270_v7 = vld [vmem:[%s4241_s26 + $0x90] ss:$12 sps:$4 sm:$0xff]   ;;  %1098 = vmatpush1.bf16.msra.mxu0 %v3266_v3  ;;  %3017 = vmatpush3.bf16.msra.mxu1 %v3267_v5  ;;  %v3274_v14 = vld [vmem:[%s4241_s26 + $0x78] ss:$12 sps:$4 sm:$0xff]   ;;  %v3275_v15 = vld [vmem:[%s4241_s26 + $0x80] ss:$12 sps:$4 sm:$0xff]  }
  0xfb   : > { %1099 = vmatprep.subr.bf16.mxu0 %v3268_v6  ;;  %3018 = vmatprep.subr.bf16.mxu1 %v3830_v4  ;;  %v3272_v13 = vld [vmem:[%s4241_s26 + $0x7c] ss:$12 sps:$4 sm:$0xff]   ;;  %v3276_v16 = vld [vmem:[%s4241_s26 + $0x64] ss:$12 sps:$4 sm:$0xff]   ;;  %v3278_v17 = vld [vmem:[%s4241_s26 + $0x60] ss:$12 sps:$4 sm:$0xff]  }
  0xfc   : > { %v3279_v18 = vld [vmem:[%s4241_s26 + $0x68] ss:$12 sps:$4 sm:$0xff]   ;;  %v3280_v19 = vld [vmem:[%s4241_s26 + $0x4c] ss:$12 sps:$4 sm:$0xff]   ;;  %v3283_v21 = vld [vmem:[%s4241_s26 + $0x50] ss:$12 sps:$4 sm:$0xff]   ;;  %1129 = vmatprep.mubr.bf16.mxu0 %v3831_v23 }
  0xfd   : > { %v3282_v20 = vld [vmem:[%s4241_s26 + $0x48] ss:$12 sps:$4 sm:$0xff]   ;;  %vm3832_vm0 = vmmov 0   ;;  %v3286_v24 = vld [vmem:[%s4241_s26 + $0x30] ss:$12 sps:$4 sm:$0xff]   ;;  %v4349_v43 = vshrl.u32 %v881_v42, 7 }
  0xfe   : > { %v4297_v1 = vld [vmem:[%s4291_s13] sm:$0xff]  ;;  %1100 = vmatpush1.bf16.msra.mxu0 %v3270_v7  ;;  %3019 = vmatpush3.bf16.msra.mxu1 %v3271_v8  ;;  %v2818_v36 = vld [vmem:[%s861_s30] ss:$0 sm:$0xff]  ;;  %vm1182_vm1 = vcmask 261120   ;;  %s3833_s6 = smov 96   ;;  %s4717_s22 = sld [smem:[#allocation32_spill]] }
  0xff   : > { %893 = vadd.xlane.f32.xlu0 %v4297_v1  ;;  %3020 = vmatprep.subr.bf16.mxu1 %v3830_v4  ;;  %v3284_v22 = vld [vmem:[%s4241_s26 + $0x34] ss:$12 sps:$4 sm:$0xff]   ;;  %v3287_v25 = vld [vmem:[%s4241_s26 + $0x38] ss:$12 sps:$4 sm:$0xff]   ;;  %v3288_v26 = vld [vmem:[%s4241_s26 + $0x1c] ss:$12 sps:$4 sm:$0xff]  }
 0x100   : > { %1101 = vmatprep.subr.bf16.mxu0 %v3272_v13  ;;  %3032 = vmatprep.mubr.msk.bf16.mxu1 %vm3832_vm0, %v3830_v4  ;;  %v3290_v27 = vld [vmem:[%s4241_s26 + $0x18] ss:$12 sps:$4 sm:$0xff]   ;;  %v3291_v28 = vld [vmem:[%s4241_s26 + $0x20] ss:$12 sps:$4 sm:$0xff]   ;;  %v3295_v31 = vld [vmem:[%s4241_s26 + $0x8] ss:$12 sps:$4 sm:$0xff]  }
 0x101   : > { %v3292_v29 = vld [vmem:[%s4241_s26 + $0x4] ss:$12 sps:$4 sm:$0xff]   ;;  %v3294_v30 = vld [vmem:[%s4241_s26] ss:$12 sps:$4 sm:$0xff]   ;;  %s4716_s26 = scalar_lea.vmem [#allocation7], %s4232_s8  ;;  %v960_v44 = vsub.s32 1, %v4349_v43 }
 0x102   : > { %1102 = vmatpush1.bf16.msra.mxu0 %v3274_v14  ;;  %3021 = vmatpush3.bf16.msra.mxu1 %v3275_v15  ;;  %v2819_v38 = vld [vmem:[%s4716_s26] ss:$0 sm:$0xff]  ;;  %v956_v45 = vsub.s32 0, %v4349_v43  ;;  %v964_v47 = vsub.s32 2, %v4349_v43  ;;  %vm1245_vm2 = vcmask 1043456   ;;  %v884_v6 = vand.u32 127, %v881_v42 }
 0x103   : > { %3022 = vmatprep.subr.bf16.mxu1 %v3830_v4  ;;  %1103 = vmatprep.subr.bf16.mxu0 %v3276_v16  ;;  %v952_v46 = vld [vmem:[%s4280_s7] sm:$0x7]  ;;  %s3834_s7 = smov 32   ;;  %v3835_v8 = vmov -1e+09   ;;  %vm1229_vm6 = vcmask 64512  }
 0x104   : > { %v961_v48 = vrot.slane %v952_v46, %v960_v44  ;;  %v957_v51 = vrot.slane %v952_v46, %v956_v45  ;;  %v965_v54 = vrot.slane %v952_v46, %v964_v47  ;;  %s886_s25 = sld [smem:[#allocation3 + %s4717_s22]]  ;;  %vm885_vm3 = vcmp.le.s32.totalorder %v884_v6, %v4349_v43  ;;  %s3836_s30 = smov 64  }
 0x105   : > { %vm1635_vm7 = vcmask 523264   ;;  %vm1637_vm8 = vcmask 785408   ;;  %s4719_s19 = scalar_lea.vmem [#allocation13], %s4232_s8  ;;  %s4720_s3 = scalar_lea.vmem [#allocation15], %s4232_s8 }
 0x106   : > { %1104 = vmatpush1.bf16.msra.mxu0 %v3278_v17  ;;  %3023 = vmatpush3.bf16.msra.mxu1 %v3279_v18  ;;  %s4722_s5 = sld [smem:[#allocation31_spill]] }
 0x107   : > { %1105 = vmatprep.subr.bf16.mxu0 %v3280_v19  ;;  %3024 = vmatprep.subr.bf16.mxu1 %v3830_v4 }
 0x10a   : > { %1106 = vmatpush1.bf16.msra.mxu0 %v3282_v20  ;;  %3025 = vmatpush3.bf16.msra.mxu1 %v3283_v21  ;;  %v887_v7 = vstv %s886_s25 }
 0x10b   : > { %1107 = vmatprep.subr.bf16.mxu0 %v3284_v22  ;;  %3026 = vmatprep.subr.bf16.mxu1 %v3830_v4  ;;  %vm888_vm4 = vcmp.lt.s32.totalorder %v884_v6, %v887_v7 }
 0x10c   : > { %vm889_vm5 = vmand %vm885_vm3, %vm888_vm4  ;;  %p2928_p3 = scmp.ne.s32.totalorder %s4722_s5, 1 }
 0x10d   : > { %s4723_s11 = sld [smem:[#allocation55_spill]] (!%p2928_p3) }
 0x10e   : > { %1108 = vmatpush1.bf16.msra.mxu0 %v3286_v24  ;;  %3027 = vmatpush3.bf16.msra.mxu1 %v3287_v25  ;;  %s4724_s20 = sld [smem:[#allocation56_spill]] (!%p2928_p3) }
 0x10f   : > { %1109 = vmatprep.subr.bf16.mxu0 %v3288_v26  ;;  %3028 = vmatprep.subr.bf16.mxu1 %v3830_v4 }
 0x112   : > { %1110 = vmatpush1.bf16.msra.mxu0 %v3290_v27  ;;  %3029 = vmatpush3.bf16.msra.mxu1 %v3291_v28 }
 0x113   : > { %1111 = vmatprep.subr.bf16.mxu0 %v3292_v29  ;;  %3030 = vmatprep.subr.bf16.mxu1 %v3830_v4 }
 0x116   : > { %1112 = vmatpush1.bf16.msra.mxu0 %v3294_v30  ;;  %3031 = vmatpush3.bf16.msra.mxu1 %v3295_v31 }
 0x117   : > { %3036 = vmatprep.subr.bf16.mxu1 %v3830_v4  ;;  %3060 = vmatprep.subr.bf16.mxu0 %v3830_v4 }
 0x188   : > { %v894_v9 = vpop.xlane.xlu0 %893 }
 0x189   : > { %v896_v10 = vmul.f32 0.0078125, %v894_v9  ;;  %v4375_v9 = vsel %vm889_vm5, 0.0, %v3835_v8 }
 0x18b   : > { %v897_v11 = vsub.f32 %v4297_v1, %v896_v10 }
 0x18d   : > { %v898_v12 = vmul.f32 %v897_v11, %v897_v11 }
 0x18f   : > { %899 = vadd.xlane.f32.xlu0 %v898_v12 }
 0x218   : > { %v900_v32 = vpop.xlane.xlu0 %899 }
 0x219   : > { %v901_v33 = vmul.f32 0.0078125, %v900_v32 }
 0x21b   : > { %v902_v34 = vadd.f32 1e-05, %v901_v33 }
 0x21d   : > { %3384 = vrsqrt.f32 %v902_v34 }
 0x22a   : > { %v3385_v35 = vpop.eup %3384 }
 0x22b   : > { %v904_v37 = vmul.f32 %v3385_v35, %v897_v11 }
 0x22d   : > { %v911_v39 = vmul.f32 %v2818_v36, %v904_v37 }
 0x22f   : > { %v918_v40 = vadd.f32 %v2819_v38, %v911_v39 }
 0x231   : > { %v919_v41 = vpack.c.bf16 %v918_v40, %v918_v40 }
 0x233   : > { %1130 = vmatmul.mubr.bf16.vlgmr.msra.gmra.mxu0 %v919_v41  ;;  %3033 = vmatmul.mubr.bf16.vlgmr.msra.gmra.mxu1 %v919_v41 }
 0x234   : > { %3038 = vmatprep.mubr.msk.bf16.mxu1 %vm3832_vm0, %v3830_v4  ;;  %3062 = vmatprep.mubr.msk.bf16.mxu0 %vm3832_vm0, %v3830_v4 }
 0x2f3   : > { %v1131_v49 = vpop.f32.mrf.mxu0  ;;  %v1172_v50 = vpop.f32.mrf.mxu1 }
 0x2f4   : > { %v1132_v58 = vadd.f32 %v1131_v49, %v957_v51  ;;  %v1173_v62 = vadd.f32 %v1172_v50, %v965_v54 }
 0x2f5   : > { %v1133_v52 = vpop.f32.mrf.mxu0  ;;  %v3034_v53 = vpop.f32.mrf.mxu1 }
 0x2f6   : > { %v1134_v55 = vadd.f32 %v1133_v52, %v961_v48  ;;  %v1178_v0 = vmul.f32 0.17677669, %v1132_v58  ;;  %v4364_v2 = vpack.c.bf16 %v1173_v62, %v1173_v62 }
 0x2f7   : > { %v1135_v56 = vpop.f32.mrf.mxu0  ;;  %v1175_v57 = vpop.f32.mrf.mxu1 }
 0x2f8   : > { %v1180_v59 = vpack.c.bf16 %v1134_v55, %v1134_v55  ;;  %v1179_v3 = vpack.c.bf16 %v1178_v0, %v1178_v0  ;;  %v1247_v5 = vsel %vm1245_vm2, %v4364_v2, 0 }
 0x2f9   : > { %v1136_v60 = vpop.f32.mrf.mxu0  ;;  %v3035_v61 = vpop.f32.mrf.mxu1 }
 0x2fa   : > { %1293 = vrot.lane.b32.xlu0 %v1180_v59, %s3833_s6  ;;  %v1187_v63 = vsel %vm1182_vm1, %v1180_v59, 0 }
 0x2fb   : > { %3037 = vmatpush3.bf16.xpose.msra.mxu1 %v1187_v63 }
 0x2fc   : > { %3042 = vmatprep.subr.bf16.mxu1 %v3830_v4 }
 0x2fe   : > { %1514 = vrot.lane.b32.xlu0 %v1180_v59, %s3834_s7 }
 0x302   : > { %3039 = vmatmul.mubr.msk.bf16.vlgmr.msra.gmra.mxu1 %vm1182_vm1, %v1179_v3 }
 0x303   : > { %3043 = vmatpush3.bf16.msra.mxu1 %v1247_v5  ;;  %3044 = vmatprep.mubr.msk.bf16.mxu1 %vm3832_vm0, %v3830_v4 }
 0x304   : > { %3048 = vmatprep.subr.bf16.mxu1 %v3830_v4 }
 0x36c   : > { %v1294_v24 = vpop.permute.xlu0 %1293 }
 0x36d   : > { %v1299_v33 = vsel %vm1182_vm1, %v1294_v24, 0 }
 0x370   : > { %v1515_v28 = vpop.permute.xlu0 %1514 }
 0x371   : > { %v1520_v31 = vsel %vm1182_vm1, %v1515_v28, 0 }
 0x3c2   : > { %v1223_v10 = vpop.f32.mrf.mxu1 }
 0x3c3   : > { %v1224_v11 = vadd.f32 %v1223_v10, %v4375_v9 }
 0x3c4   : > { %v3040_v12 = vpop.f32.mrf.mxu1 }
 0x3c5   : > { %v1230_v13 = vsel %vm1229_vm6, %v1224_v11, -inf }
 0x3c6   : > { %1231 = vmax.xlane.f32.xlu1 %v1230_v13  ;;  %v1226_v14 = vpop.f32.mrf.mxu1 }
 0x3c8   : > { %v3041_v15 = vpop.f32.mrf.mxu1 }
 0x44f   : > { %v1232_v16 = vpop.xlane.xlu1 %1231 }
 0x450   : > { %v1233_v17 = vsub.f32 %v1224_v11, %v1232_v16 }
 0x452   : > { %v1234_v18 = vmul.f32 1.442695, %v1233_v17 }
 0x454   : > { %3386 = vpow2.f32 %v1234_v18 }
 0x461   : > { %v3387_v19 = vpop.eup %3386 }
 0x462   : > { %v1236_v20 = vsel %vm1229_vm6, %v3387_v19, 0.0 }
 0x463   : > { %1237 = vadd.xlane.f32.xlu1 %v1236_v20 }
 0x474   : > { %1290 = vrot.lane.b32.xlu1 %v1179_v3, %s3833_s6 }
 0x478   : > { %1404 = vrot.lane.b32.xlu1 %v1180_v59, %s3836_s30 }
 0x47c   : > { %1402 = vrot.lane.b32.xlu1 %v1179_v3, %s3836_s30 }
 0x480   : > { %1512 = vrot.lane.b32.xlu1 %v1179_v3, %s3834_s7 }
 0x4ec   : > { %v1238_v21 = vpop.xlane.xlu1 %1237 }
 0x4ed   : > { %3388 = vrcp.f32 %v1238_v21 }
 0x4f0   : > { %v1291_v22 = vpop.permute.xlu1 %1290 }
 0x4f4   : > { %v1405_v25 = vpop.permute.xlu1 %1404 }
 0x4f5   : > { %v1410_v26 = vsel %vm1182_vm1, %v1405_v25, 0 }
 0x4f6   : > { %3061 = vmatpush3.bf16.xpose.msra.mxu0 %v1410_v26 }
 0x4f7   : > { %3072 = vmatprep.subr.bf16.mxu0 %v3830_v4 }
 0x4f8   : > { %v1403_v30 = vpop.permute.xlu1 %1402 }
 0x4fa   : > { %v3389_v27 = vpop.eup %3388 }
 0x4fb   : > { %v1240_v29 = vmul.f32 %v3389_v27, %v3387_v19 }
 0x4fc   : > { %v1513_v34 = vpop.permute.xlu1 %1512 }
 0x4fd   : > { %3063 = vmatmul.mubr.msk.bf16.vlgmr.msra.gmra.mxu0 %vm1182_vm1, %v1403_v30  ;;  %v1241_v32 = vpack.c.bf16 %v1240_v29, %v1240_v29 }
 0x4fe   : > { %3073 = vmatpush3.bf16.xpose.msra.mxu0 %v1520_v31  ;;  %3074 = vmatprep.mubr.msk.bf16.mxu0 %vm3832_vm0, %v3830_v4 }
 0x4ff   : > { %3045 = vmatmul.mubr.msk.bf16.vlgmr.msra.gmra.mxu1 %vm1229_vm6, %v1241_v32  ;;  %3084 = vmatprep.subr.bf16.mxu0 %v3830_v4 }
 0x500   : > { %3049 = vmatpush3.bf16.xpose.msra.mxu1 %v1299_v33  ;;  %3050 = vmatprep.mubr.msk.bf16.mxu1 %vm3832_vm0, %v3830_v4  ;;  %v3296_v33 = vld [vmem:[%s4243_s29 + $0x38] sm:$0xff]  }
 0x501   : > { %3054 = vmatprep.subr.bf16.mxu1 %v3830_v4 }
 0x505   : > { %3075 = vmatmul.mubr.msk.bf16.vlgmr.msra.gmra.mxu0 %vm1182_vm1, %v1513_v34  ;;  %v3297_v34 = vld [vmem:[%s4243_s29 + $0x30] sm:$0xff]  }
 0x506   : > { %3100 = vmatprep.mubr.msk.bf16.mxu0 %vm3832_vm0, %v3830_v4  ;;  %3085 = vmatpush3.bf16.msra.mxu0 %v3296_v33  ;;  %v3334_v33 = vld [vmem:[%s4257_s24 + $0x40] ss:$16 sps:$4 sm:$0xff]  }
 0x507   : > { %3051 = vmatmul.mubr.msk.bf16.vlgmr.msra.gmra.mxu1 %vm1182_vm1, %v1291_v22  ;;  %3086 = vmatprep.subr.bf16.mxu0 %v3830_v4 }
 0x508   : > { %3056 = vmatprep.mubr.msk.bf16.mxu1 %vm3832_vm0, %v3830_v4 }
 0x50a   : > { %3087 = vmatpush3.bf16.msra.mxu0 %v3297_v34  ;;  %v3337_v34 = vld [vmem:[%s4257_s24 + $0x48] ss:$16 sps:$4 sm:$0xff]  }
 0x50b   : > { %3088 = vmatprep.subr.bf16.mxu0 %v3830_v4 }
 0x5bd   : > { %v1446_v35 = vpop.f32.mrf.mxu0 }
 0x5be   : > { %v1447_v36 = vadd.f32 %v1446_v35, %v4375_v9  ;;  %v3298_v35 = vld [vmem:[%s4243_s29 + $0x28] sm:$0xff]  }
 0x5bf   : > { %v4403_v37 = vpop.f32.mrf.mxu1  ;;  %v3064_v38 = vpop.f32.mrf.mxu0  ;;  %3089 = vmatpush3.bf16.msra.mxu0 %v3298_v35  ;;  %v3342_v35 = vld [vmem:[%s4257_s24 + $0x24] ss:$16 sps:$4 sm:$0xff]  }
 0x5c0   : > { %v1452_v39 = vsel %vm1229_vm6, %v1447_v36, -inf  ;;  %3090 = vmatprep.subr.bf16.mxu0 %v3830_v4  ;;  %v3300_v38 = vld [vmem:[%s4243_s29 + $0x18] sm:$0xff]  }
 0x5c1   : > { %1453 = vmax.xlane.f32.xlu1 %v1452_v39  ;;  %v3046_v40 = vpop.f32.mrf.mxu1  ;;  %v1449_v41 = vpop.f32.mrf.mxu0  ;;  %v3301_v39 = vld [vmem:[%s4243_s29 + $0x10] sm:$0xff]  }
 0x5c2   : > { %v3302_v40 = vld [vmem:[%s4243_s29 + $0x8] sm:$0xff]  }
 0x5c3   : > { %v1286_v42 = vpop.f32.mrf.mxu1  ;;  %v3065_v46 = vpop.f32.mrf.mxu0 }
 0x5c4   : > { %v3303_v46 = vld [vmem:[%s4243_s29] sm:$0xff]  }
 0x5c5   : > { %v3047_v48 = vpop.f32.mrf.mxu1  ;;  %v1556_v49 = vpop.f32.mrf.mxu0 }
 0x5c6   : > { %v1557_v55 = vadd.f32 %v1556_v49, %v4375_v9 }
 0x5c7   : > { %v1335_v50 = vpop.f32.mrf.mxu1  ;;  %v3076_v51 = vpop.f32.mrf.mxu0 }
 0x5c8   : > { %v1336_v52 = vadd.f32 %v1335_v50, %v4375_v9  ;;  %v1562_v60 = vsel %vm1229_vm6, %v1557_v55, -inf }
 0x5c9   : > { %v3052_v53 = vpop.f32.mrf.mxu1  ;;  %v1559_v54 = vpop.f32.mrf.mxu0 }
 0x5ca   : > { %v1341_v56 = vsel %vm1229_vm6, %v1336_v52, -inf }
 0x5cb   : > { %v3077_v57 = vpop.f32.mrf.mxu0  ;;  %1342 = vmax.xlane.f32.xlu0 %v1341_v56  ;;  %v1338_v58 = vpop.f32.mrf.mxu1 }
 0x5cd   : > { %v3053_v59 = vpop.f32.mrf.mxu1 }
 0x5cf   : > { %1563 = vmax.xlane.f32.xlu0 %v1562_v60 }
 0x64a   : > { %v1454_v61 = vpop.xlane.xlu1 %1453 }
 0x64b   : > { %v1455_v62 = vsub.f32 %v1447_v36, %v1454_v61  ;;  %v3299_v36 = vld [vmem:[%s4243_s29 + $0x20] sm:$0xff]   ;;  %s4718_s29 = scalar_lea.vmem [#allocation12], %s4232_s8 }
 0x64c   : > { %3091 = vmatpush3.bf16.msra.mxu0 %v3299_v36  ;;  %v3345_v36 = vld [vmem:[%s4257_s24 + $0x2c] ss:$16 sps:$4 sm:$0xff]  }
 0x64d   : > { %v1456_v63 = vmul.f32 1.442695, %v1455_v62  ;;  %3092 = vmatprep.subr.bf16.mxu0 %v3830_v4 }
 0x64f   : > { %3390 = vpow2.f32 %v1456_v63 }
 0x650   : > { %3093 = vmatpush3.bf16.msra.mxu0 %v3300_v38  ;;  %v3340_v38 = vld [vmem:[%s4257_s24 + $0x20] ss:$16 sps:$4 sm:$0xff]  }
 0x651   : > { %3094 = vmatprep.subr.bf16.mxu0 %v3830_v4 }
 0x654   : > { %v1343_v0 = vpop.xlane.xlu0 %1342  ;;  %3095 = vmatpush3.bf16.msra.mxu0 %v3301_v39  ;;  %v3343_v39 = vld [vmem:[%s4257_s24 + $0x28] ss:$16 sps:$4 sm:$0xff]  }
 0x655   : > { %v1344_v3 = vsub.f32 %v1336_v52, %v1343_v0  ;;  %3096 = vmatprep.subr.bf16.mxu0 %v3830_v4  ;;  %v2852_v0 = vld [vmem:[%s4718_s29] ss:$0 sm:$0xff] }
 0x657   : > { %v1345_v5 = vmul.f32 1.442695, %v1344_v3 }
 0x658   : > { %v1564_v6 = vpop.xlane.xlu0 %1563  ;;  %3097 = vmatpush3.bf16.msra.mxu0 %v3302_v40  ;;  %v3348_v40 = vld [vmem:[%s4257_s24 + $0x4] ss:$16 sps:$4 sm:$0xff]  }
 0x659   : > { %3392 = vpow2.f32 %v1345_v5  ;;  %v1565_v7 = vsub.f32 %v1557_v55, %v1564_v6  ;;  %3098 = vmatprep.subr.bf16.mxu0 %v3830_v4 }
 0x65b   : > { %v1566_v8 = vmul.f32 1.442695, %v1565_v7 }
 0x65c   : > { %v3391_v9 = vpop.eup %3390  ;;  %3099 = vmatpush3.bf16.msra.mxu0 %v3303_v46  ;;  %v3349_v46 = vld [vmem:[%s4257_s24 + $0x8] ss:$16 sps:$4 sm:$0xff]  }
 0x65d   : > { %3394 = vpow2.f32 %v1566_v8  ;;  %v1458_v10 = vsel %vm1229_vm6, %v3391_v9, 0.0 }
 0x65e   : > { %1459 = vadd.xlane.f32.xlu0 %v1458_v10  ;;  %v3306_v10 = vld [vmem:[%s4257_s24 + $0xe4] ss:$16 sps:$4 sm:$0xff]  }
 0x666   : > { %v3393_v11 = vpop.eup %3392 }
 0x667   : > { %v1347_v12 = vsel %vm1229_vm6, %v3393_v11, 0.0 }
 0x668   : > { %1348 = vadd.xlane.f32.xlu0 %v1347_v12  ;;  %v3309_v12 = vld [vmem:[%s4257_s24 + $0xec] ss:$16 sps:$4 sm:$0xff]  }
 0x669   : > { %2035 = vmatprep.subr.bf16.mxu0 %v3309_v12  ;;  %v3368_v12 = vld [vmem:[%s4287_s10 + $0x58] sm:$0xff]  }
 0x66a   : > { %v3395_v13 = vpop.eup %3394 }
 0x66b   : > { %v1568_v14 = vsel %vm1229_vm6, %v3395_v13, 0.0 }
 0x66c   : > { %1569 = vadd.xlane.f32.xlu1 %v1568_v14  ;;  %v3313_v14 = vld [vmem:[%s4257_s24 + $0xc8] ss:$16 sps:$4 sm:$0xff]  }
 0x67d   : > { %1464 = vrot.lane.b32.xlu1 %v4364_v2, %s3836_s30 }
 0x67e   : > { %1354 = vrot.lane.b32.xlu0 %v4364_v2, %s3833_s6 }
 0x681   : > { %1574 = vrot.lane.b32.xlu1 %v4364_v2, %s3834_s7 }
 0x6e7   : > { %v1460_v15 = vpop.xlane.xlu0 %1459 }
 0x6f1   : > { %v1349_v16 = vpop.xlane.xlu0 %1348 }
 0x6f2   : > { %3396 = vrcp.f32 %v1349_v16 }
 0x6f3   : > { %3398 = vrcp.f32 %v1460_v15 }
 0x6f5   : > { %v1355_v17 = vpop.permute.xlu0 %1354  ;;  %v1570_v19 = vpop.xlane.xlu1 %1569 }
 0x6f6   : > { %v1360_v18 = vsel %vm1245_vm2, %v1355_v17, 0  ;;  %3400 = vrcp.f32 %v1570_v19  ;;  %v3318_v19 = vld [vmem:[%s4257_s24 + $0xa4] ss:$16 sps:$4 sm:$0xff]  }
 0x6f7   : > { %3055 = vmatpush3.bf16.msra.mxu1 %v1360_v18 }
 0x6f8   : > { %3066 = vmatprep.subr.bf16.mxu1 %v3830_v4 }
 0x6f9   : > { %v1465_v22 = vpop.permute.xlu1 %1464 }
 0x6fa   : > { %v1470_v26 = vsel %vm1245_vm2, %v1465_v22, 0  ;;  %v3319_v22 = vld [vmem:[%s4257_s24 + $0xa8] ss:$16 sps:$4 sm:$0xff]  }
 0x6fd   : > { %v1575_v27 = vpop.permute.xlu1 %1574 }
 0x6fe   : > { %v1580_v30 = vsel %vm1245_vm2, %v1575_v27, 0  ;;  %v3330_v27 = vld [vmem:[%s4257_s24 + $0x64] ss:$16 sps:$4 sm:$0xff]  }
 0x6ff   : > { %v3397_v20 = vpop.eup %3396 }
 0x700   : > { %v1351_v21 = vmul.f32 %v3397_v20, %v3393_v11  ;;  %v3399_v25 = vpop.eup %3398  ;;  %v3307_v11 = vld [vmem:[%s4257_s24 + $0xe8] ss:$16 sps:$4 sm:$0xff]   ;;  %v3321_v20 = vld [vmem:[%s4257_s24 + $0xac] ss:$16 sps:$4 sm:$0xff]  }
 0x701   : > { %v1462_v2 = vmul.f32 %v3399_v25, %v3391_v9  ;;  %v3304_v9 = vld [vmem:[%s4257_s24 + $0xe0] ss:$16 sps:$4 sm:$0xff]   ;;  %v3324_v25 = vld [vmem:[%s4257_s24 + $0x84] ss:$16 sps:$4 sm:$0xff]  }
 0x702   : > { %v1352_v24 = vpack.c.bf16 %v1351_v21, %v1351_v21  ;;  %v3316_v21 = vld [vmem:[%s4257_s24 + $0xa0] ss:$16 sps:$4 sm:$0xff]  }
 0x703   : > { %v1463_v28 = vpack.c.bf16 %v1462_v2, %v1462_v2  ;;  %v3401_v29 = vpop.eup %3400  ;;  %v3327_v2 = vld [vmem:[%s4257_s24 + $0x8c] ss:$16 sps:$4 sm:$0xff]  }
 0x704   : > { %3057 = vmatmul.mubr.msk.bf16.vlgmr.msra.gmra.mxu1 %vm1229_vm6, %v1352_v24  ;;  %v1572_v31 = vmul.f32 %v3401_v29, %v3395_v13  ;;  %v3312_v13 = vld [vmem:[%s4257_s24 + $0xc4] ss:$16 sps:$4 sm:$0xff]   ;;  %v3322_v24 = vld [vmem:[%s4257_s24 + $0x80] ss:$16 sps:$4 sm:$0xff]  }
 0x705   : > { %3067 = vmatpush3.bf16.msra.mxu1 %v1470_v26  ;;  %3068 = vmatprep.mubr.msk.bf16.mxu1 %vm3832_vm0, %v3830_v4  ;;  %v3325_v26 = vld [vmem:[%s4257_s24 + $0x88] ss:$16 sps:$4 sm:$0xff]   ;;  %v3328_v29 = vld [vmem:[%s4257_s24 + $0x60] ss:$16 sps:$4 sm:$0xff]  }
 0x706   : > { %3078 = vmatprep.subr.bf16.mxu1 %v3830_v4  ;;  %v1573_v32 = vpack.c.bf16 %v1572_v31, %v1572_v31  ;;  %v3336_v31 = vld [vmem:[%s4257_s24 + $0x44] ss:$16 sps:$4 sm:$0xff]  }
 0x70c   : > { %3069 = vmatmul.mubr.msk.bf16.vlgmr.msra.gmra.mxu1 %vm1229_vm6, %v1463_v28  ;;  %v3333_v28 = vld [vmem:[%s4257_s24 + $0x6c] ss:$16 sps:$4 sm:$0xff]  }
 0x70d   : > { %3079 = vmatpush3.bf16.msra.mxu1 %v1580_v30  ;;  %3080 = vmatprep.mubr.msk.bf16.mxu1 %vm3832_vm0, %v3830_v4  ;;  %v3331_v30 = vld [vmem:[%s4257_s24 + $0x68] ss:$16 sps:$4 sm:$0xff]  }
 0x70e   : > { %1994 = vmatprep.subr.bf16.mxu1 %v3306_v10  ;;  %v3366_v10 = vld [vmem:[%s4287_s10 + $0x20] sm:$0xff]  }
 0x714   : > { %3081 = vmatmul.mubr.msk.bf16.vlgmr.msra.gmra.mxu1 %vm1229_vm6, %v1573_v32  ;;  %v3339_v32 = vld [vmem:[%s4257_s24 + $0x4c] ss:$16 sps:$4 sm:$0xff]  }
 0x715   : > { %2026 = vmatprep.mubr.bf16.mxu1 %v3831_v23  ;;  %1995 = vmatpush1.bf16.msra.mxu1 %v3304_v9  ;;  %v3365_v9 = vld [vmem:[%s4287_s10 + $0xe0] sm:$0xff]  }
 0x716   : > { %1996 = vmatprep.subr.bf16.mxu1 %v3312_v13  ;;  %v3369_v13 = vld [vmem:[%s4287_s10 + $0xd8] sm:$0xff]  }
 0x7c4   : > { %v1396_v41 = vpop.f32.mrf.mxu1 }
 0x7c5   : > { %1623 = vrot.lane.b32.xlu1 %v1396_v41, %s3834_s7  ;;  %v3351_v41 = vld [vmem:[%s4257_s24 + $0xc] ss:$16 sps:$4 sm:$0xff]  }
 0x7c6   : > { %v3058_v42 = vpop.f32.mrf.mxu1 }
 0x7c7   : > { %v3346_v42 = vld [vmem:[%s4257_s24] ss:$16 sps:$4 sm:$0xff]  }
 0x7c8   : > { %v1399_v48 = vpop.f32.mrf.mxu1 }
 0x7ca   : > { %v3059_v49 = vpop.f32.mrf.mxu1 }
 0x7cc   : > { %v1506_v50 = vpop.f32.mrf.mxu1 }
 0x7cd   : > { %1627 = vrot.lane.b32.xlu0 %v1506_v50, %s3836_s30 }
 0x7ce   : > { %v3070_v51 = vpop.f32.mrf.mxu1 }
 0x7d0   : > { %v1509_v52 = vpop.f32.mrf.mxu1 }
 0x7d1   : > { %v2861_v52 = vld [vmem:[%s4719_s19] ss:$0 sm:$0xff] }
 0x7d2   : > { %v3071_v53 = vpop.f32.mrf.mxu1 }
 0x7d4   : > { %v1616_v54 = vpop.f32.mrf.mxu1 }
 0x7d5   : > { %1631 = vrot.lane.b32.xlu1 %v1616_v54, %s3833_s6  ;;  %v2862_v54 = vld [vmem:[%s4720_s3] ss:$0 sm:$0xff] }
 0x7d6   : > { %v3082_v55 = vpop.f32.mrf.mxu1 }
 0x7d8   : > { %v1619_v56 = vpop.f32.mrf.mxu1 }
 0x7da   : > { %v3083_v57 = vpop.f32.mrf.mxu1 }
 0x837   : > { %v1624_v58 = vpop.permute.xlu1 %1623 }
 0x838   : > { %v1634_v59 = vsel %vm1182_vm1, %v4403_v37, %v1624_v58  ;;  %v3352_v58 = vld [vmem:[%s4287_s10 + $0x78] sm:$0xff]  }
 0x83f   : > { %v1628_v4 = vpop.permute.xlu0 %1627 }
 0x840   : > { %v1636_v60 = vsel %vm1635_vm7, %v1634_v59, %v1628_v4  ;;  %v3353_v4 = vld [vmem:[%s4287_s10 + $0xf8] sm:$0xff]  }
 0x841   : > { %v3354_v59 = vld [vmem:[%s4287_s10 + $0x38] sm:$0xff]  }
 0x847   : > { %v1632_v61 = vpop.permute.xlu1 %1631 }
 0x848   : > { %v1638_v62 = vsel %vm1637_vm8, %v1636_v60, %v1632_v61  ;;  %v3355_v60 = vld [vmem:[%s4287_s10 + $0xb8] sm:$0xff]   ;;  %v3356_v61 = vld [vmem:[%s4287_s10 + $0x70] sm:$0xff]  }
 0x849   : > { %v1639_v63 = vpack.c.bf16 %v1638_v62, %v1638_v62  ;;  %v3357_v62 = vld [vmem:[%s4287_s10 + $0xf0] sm:$0xff]  }
 0x84b   : > { %3101 = vmatmul.mubr.bf16.vlgmr.msra.gmra.mxu0 %v1639_v63  ;;  %v3358_v63 = vld [vmem:[%s4287_s10 + $0x30] sm:$0xff]  }
 0x84c   : > { %2067 = vmatprep.mubr.bf16.mxu0 %v3831_v23  ;;  %v3315_v23 = vld [vmem:[%s4257_s24 + $0xcc] ss:$16 sps:$4 sm:$0xff]   ;;  %2036 = vmatpush1.bf16.msra.mxu0 %v3307_v11  ;;  %v3367_v11 = vld [vmem:[%s4287_s10 + $0xa0] sm:$0xff]  }
 0x84d   : > { %2037 = vmatprep.subr.bf16.mxu0 %v3315_v23  ;;  %v3370_v23 = vld [vmem:[%s4287_s10 + $0x18] sm:$0xff]  }
 0x850   : > { %2038 = vmatpush1.bf16.msra.mxu0 %v3313_v14  ;;  %v3372_v14 = vld [vmem:[%s4287_s10 + $0x50] sm:$0xff]  }
 0x851   : > { %2039 = vmatprep.subr.bf16.mxu0 %v3321_v20  ;;  %v3378_v20 = vld [vmem:[%s4287_s10 + $0x8] sm:$0xff]  }
 0x854   : > { %2040 = vmatpush1.bf16.msra.mxu0 %v3319_v22  ;;  %v3380_v22 = vld [vmem:[%s4287_s10 + $0x40] sm:$0xff]  }
 0x855   : > { %2041 = vmatprep.subr.bf16.mxu0 %v3327_v2  ;;  %v1812_v2 = vld [vmem:[%s4285_s0] sm:$0xf] }
 0x858   : > { %2042 = vmatpush1.bf16.msra.mxu0 %v3325_v26  ;;  %v3383_v26 = vld [vmem:[%s4287_s10 + $0x80] sm:$0xff]  }
 0x859   : > { %2043 = vmatprep.subr.bf16.mxu0 %v3333_v28  ;;  %v1817_v28 = vrot.slane %v1812_v2, %v956_v45 }
 0x85c   : > { %2044 = vmatpush1.bf16.msra.mxu0 %v3331_v30  ;;  %v1821_v30 = vrot.slane %v1812_v2, %v960_v44 }
 0x85d   : > { %2045 = vmatprep.subr.bf16.mxu0 %v3339_v32 }
 0x860   : > { %2046 = vmatpush1.bf16.msra.mxu0 %v3337_v34 }
 0x861   : > { %2047 = vmatprep.subr.bf16.mxu0 %v3345_v36 }
 0x864   : > { %2048 = vmatpush1.bf16.msra.mxu0 %v3343_v39 }
 0x865   : > { %2049 = vmatprep.subr.bf16.mxu0 %v3351_v41 }
 0x868   : > { %2050 = vmatpush1.bf16.msra.mxu0 %v3349_v46 }
 0x869   : > { %2994 = vmatprep.subr.bf16.mxu0 %v3353_v4 }
 0x90b   : > { %v1745_v3 = vpop.f32.mrf.mxu0 }
 0x90c   : > { %v1746_v5 = vadd.f32 %v2852_v0, %v1745_v3  ;;  %v3359_v0 = vld [vmem:[%s4287_s10 + $0xb0] sm:$0xff]   ;;  %v3360_v3 = vld [vmem:[%s4287_s10 + $0x68] sm:$0xff]  }
 0x90d   : > { %v3102_v6 = vpop.f32.mrf.mxu0 }
 0x90e   : > { %v4456_v37 = vadd.f32 %v1746_v5, %v4297_v1  ;;  %v3310_v1 = vld [vmem:[%s4257_s24 + $0xc0] ss:$16 sps:$4 sm:$0xff]   ;;  %v3361_v5 = vld [vmem:[%s4287_s10 + $0xe8] sm:$0xff]  }
 0x90f   : > { %v1748_v7 = vpop.f32.mrf.mxu0  ;;  %1997 = vmatpush1.bf16.msra.mxu1 %v3310_v1  ;;  %v3362_v6 = vld [vmem:[%s4287_s10 + $0x28] sm:$0xff]   ;;  %v3371_v1 = vld [vmem:[%s4287_s10 + $0x98] sm:$0xff]  }
 0x910   : > { %1754 = vadd.xlane.f32.xlu0 %v4456_v37  ;;  %1998 = vmatprep.subr.bf16.mxu1 %v3318_v19  ;;  %v3363_v7 = vld [vmem:[%s4287_s10 + $0xa8] sm:$0xff]  }
 0x911   : > { %v3103_v8 = vpop.f32.mrf.mxu0  ;;  %v3377_v19 = vld [vmem:[%s4287_s10 + $0xc8] sm:$0xff]  }
 0x912   : > { %v3364_v8 = vld [vmem:[%s4287_s10 + $0x60] sm:$0xff]  }
 0x913   : > { %1999 = vmatpush1.bf16.msra.mxu1 %v3316_v21  ;;  %v3379_v21 = vld [vmem:[%s4287_s10 + $0x88] sm:$0xff]  }
 0x914   : > { %2000 = vmatprep.subr.bf16.mxu1 %v3324_v25  ;;  %v3382_v25 = vld [vmem:[%s4287_s10] sm:$0xff]  }
 0x917   : > { %2001 = vmatpush1.bf16.msra.mxu1 %v3322_v24  ;;  %v3381_v24 = vld [vmem:[%s4287_s10 + $0xc0] sm:$0xff]  }
 0x918   : > { %2002 = vmatprep.subr.bf16.mxu1 %v3330_v27  ;;  %v1828_v27 = vsub.s32 3, %v4349_v43 }
 0x91b   : > { %2003 = vmatpush1.bf16.msra.mxu1 %v3328_v29  ;;  %v1825_v29 = vrot.slane %v1812_v2, %v964_v47 }
 0x91c   : > { %2004 = vmatprep.subr.bf16.mxu1 %v3336_v31  ;;  %v1829_v31 = vrot.slane %v1812_v2, %v1828_v27 }
 0x91f   : > { %2005 = vmatpush1.bf16.msra.mxu1 %v3334_v33 }
 0x920   : > { %2006 = vmatprep.subr.bf16.mxu1 %v3342_v35 }
 0x923   : > { %2007 = vmatpush1.bf16.msra.mxu1 %v3340_v38 }
 0x924   : > { %2008 = vmatprep.subr.bf16.mxu1 %v3348_v40 }
 0x927   : > { %2009 = vmatpush1.bf16.msra.mxu1 %v3346_v42 }
 0x928   : > { %2972 = vmatprep.subr.bf16.mxu1 %v3352_v58 }
 0x999   : > { %v1755_v15 = vpop.xlane.xlu0 %1754 }
 0x99a   : > { %v1756_v16 = vmul.f32 0.0078125, %v1755_v15  ;;  %v3373_v15 = vld [vmem:[%s4287_s10 + $0xd0] sm:$0xff]  }
 0x99c   : > { %v1757_v17 = vsub.f32 %v4456_v37, %v1756_v16  ;;  %v3374_v16 = vld [vmem:[%s4287_s10 + $0x10] sm:$0xff]  }
 0x99e   : > { %v1758_v18 = vmul.f32 %v1757_v17, %v1757_v17 }
 0x9a0   : > { %1759 = vadd.xlane.f32.xlu1 %v1758_v18  ;;  %v3376_v18 = vld [vmem:[%s4287_s10 + $0x48] sm:$0xff]  }
 0xa29   : > { %v1760_v48 = vpop.xlane.xlu1 %1759 }
 0xa2a   : > { %v1761_v49 = vmul.f32 0.0078125, %v1760_v48 }
 0xa2c   : > { %v1762_v50 = vadd.f32 1e-05, %v1761_v49 }
 0xa2e   : > { %3402 = vrsqrt.f32 %v1762_v50 }
 0xa3b   : > { %v3403_v51 = vpop.eup %3402 }
 0xa3c   : > { %v1764_v53 = vmul.f32 %v3403_v51, %v1757_v17  ;;  %v3375_v17 = vld [vmem:[%s4287_s10 + $0x90] sm:$0xff]  }
 0xa3e   : > { %v1771_v55 = vmul.f32 %v2861_v52, %v1764_v53 }
 0xa40   : > { %v1778_v56 = vadd.f32 %v2862_v54, %v1771_v55 }
 0xa42   : > { %v1779_v57 = vpack.c.bf16 %v1778_v56, %v1778_v56 }
 0xa44   : > { %2027 = vmatmul.mubr.bf16.vlgmr.msra.gmra.mxu1 %v1779_v57  ;;  %2068 = vmatmul.mubr.bf16.vlgmr.msra.gmra.mxu0 %v1779_v57 }
 0xa45   : > { %2973 = vmatpush3.bf16.msra.mxu1 %v3354_v59  ;;  %2995 = vmatpush3.bf16.msra.mxu0 %v3355_v60 }
 0xa46   : > { %2974 = vmatprep.subr.bf16.mxu1 %v3356_v61  ;;  %2996 = vmatprep.subr.bf16.mxu0 %v3357_v62 }
 0xa49   : > { %2975 = vmatpush3.bf16.msra.mxu1 %v3358_v63  ;;  %2997 = vmatpush3.bf16.msra.mxu0 %v3359_v0 }
 0xa4a   : > { %2976 = vmatprep.subr.bf16.mxu1 %v3360_v3  ;;  %2998 = vmatprep.subr.bf16.mxu0 %v3361_v5 }
 0xa4d   : > { %2977 = vmatpush3.bf16.msra.mxu1 %v3362_v6  ;;  %2999 = vmatpush3.bf16.msra.mxu0 %v3363_v7 }
 0xa4e   : > { %2978 = vmatprep.subr.bf16.mxu1 %v3364_v8  ;;  %3000 = vmatprep.subr.bf16.mxu0 %v3365_v9 }
 0xa51   : > { %2979 = vmatpush3.bf16.msra.mxu1 %v3366_v10  ;;  %3001 = vmatpush3.bf16.msra.mxu0 %v3367_v11 }
 0xa52   : > { %2980 = vmatprep.subr.bf16.mxu1 %v3368_v12  ;;  %3002 = vmatprep.subr.bf16.mxu0 %v3369_v13 }
 0xa55   : > { %2981 = vmatpush3.bf16.msra.mxu1 %v3370_v23  ;;  %3003 = vmatpush3.bf16.msra.mxu0 %v3371_v1 }
 0xa56   : > { %2982 = vmatprep.subr.bf16.mxu1 %v3372_v14  ;;  %3004 = vmatprep.subr.bf16.mxu0 %v3373_v15 }
 0xa59   : > { %2983 = vmatpush3.bf16.msra.mxu1 %v3374_v16  ;;  %3005 = vmatpush3.bf16.msra.mxu0 %v3375_v17 }
 0xa5a   : > { %2984 = vmatprep.subr.bf16.mxu1 %v3376_v18  ;;  %3006 = vmatprep.subr.bf16.mxu0 %v3377_v19 }
 0xa5d   : > { %2985 = vmatpush3.bf16.msra.mxu1 %v3378_v20  ;;  %3007 = vmatpush3.bf16.msra.mxu0 %v3379_v21 }
 0xa5e   : > { %2986 = vmatprep.subr.bf16.mxu1 %v3380_v22  ;;  %3008 = vmatprep.subr.bf16.mxu0 %v3381_v24  ;;  %v2895_v24 = vld [vmem:[%s872_s2] ss:$0 sm:$0xff] }
 0xa61   : > { %2987 = vmatpush3.bf16.msra.mxu1 %v3382_v25  ;;  %3009 = vmatpush3.bf16.msra.mxu0 %v3383_v26 }
 0xb04   : > { %v2028_v32 = vpop.f32.mrf.mxu1  ;;  %v2069_v33 = vpop.f32.mrf.mxu0 }
 0xb05   : > { %v2029_v34 = vadd.f32 %v2028_v32, %v1817_v28  ;;  %v2070_v35 = vadd.f32 %v2069_v33, %v1825_v29 }
 0xb06   : > { %v2030_v36 = vpop.f32.mrf.mxu1  ;;  %v2071_v38 = vpop.f32.mrf.mxu0 }
 0xb07   : > { %v2080_v39 = vmul.f32 0.044715, %v2029_v34  ;;  %v2082_v40 = vmul.f32 0.044715, %v2070_v35  ;;  %v2031_v41 = vadd.f32 %v2030_v36, %v1821_v30  ;;  %v2072_v42 = vadd.f32 %v2071_v38, %v1829_v31 }
 0xb08   : > { %v2032_v46 = vpop.f32.mrf.mxu1  ;;  %v2073_v48 = vpop.f32.mrf.mxu0  ;;  %v2076_v7 = vmul.f32 0.5, %v2029_v34  ;;  %v2078_v12 = vmul.f32 0.5, %v2070_v35 }
 0xb09   : > { %v2084_v45 = vmul.f32 %v2080_v39, %v2029_v34  ;;  %v2086_v49 = vmul.f32 %v2082_v40, %v2070_v35  ;;  %v2081_v50 = vmul.f32 0.044715, %v2031_v41  ;;  %v2083_v47 = vmul.f32 0.044715, %v2072_v42 }
 0xb0a   : > { %v2033_v51 = vpop.f32.mrf.mxu1  ;;  %v2074_v43 = vpop.f32.mrf.mxu0  ;;  %v2077_v10 = vmul.f32 0.5, %v2031_v41  ;;  %v2079_v13 = vmul.f32 0.5, %v2072_v42 }
 0xb0b   : > { %v2088_v44 = vmul.f32 %v2084_v45, %v2029_v34  ;;  %v2090_v52 = vmul.f32 %v2086_v49, %v2070_v35  ;;  %v2085_v53 = vmul.f32 %v2081_v50, %v2031_v41  ;;  %v2087_v54 = vmul.f32 %v2083_v47, %v2072_v42 }
 0xb0d   : > { %v2092_v55 = vadd.f32 %v2088_v44, %v2029_v34  ;;  %v2094_v56 = vadd.f32 %v2090_v52, %v2070_v35  ;;  %v2089_v57 = vmul.f32 %v2085_v53, %v2031_v41  ;;  %v2091_v58 = vmul.f32 %v2087_v54, %v2072_v42 }
 0xb0f   : > { %v2096_v4 = vmul.f32 0.7978846, %v2092_v55  ;;  %v2098_v59 = vmul.f32 0.7978846, %v2094_v56  ;;  %v2093_v60 = vadd.f32 %v2089_v57, %v2031_v41  ;;  %v2095_v61 = vadd.f32 %v2091_v58, %v2072_v42 }
 0xb11   : > { %v2097_v62 = vmul.f32 0.7978846, %v2093_v60  ;;  %v2099_v63 = vmul.f32 0.7978846, %v2095_v61  ;;  %3404 = vtanh.f32 %v2096_v4 }
 0xb12   : > { %3406 = vtanh.f32 %v2098_v59 }
 0xb13   : > { %3408 = vtanh.f32 %v2097_v62 }
 0xb14   : > { %3410 = vtanh.f32 %v2099_v63 }
 0xb1e   : > { %v3405_v0 = vpop.eup %3404 }
 0xb1f   : > { %v3407_v3 = vpop.eup %3406  ;;  %v2104_v5 = vadd.f32 1.0, %v3405_v0 }
 0xb20   : > { %v3409_v6 = vpop.eup %3408  ;;  %v2106_v8 = vadd.f32 1.0, %v3407_v3 }
 0xb21   : > { %v3411_v9 = vpop.eup %3410  ;;  %v2105_v11 = vadd.f32 1.0, %v3409_v6  ;;  %v2108_v1 = vmul.f32 %v2104_v5, %v2076_v7 }
 0xb22   : > { %v2107_v23 = vadd.f32 1.0, %v3411_v9  ;;  %v2110_v15 = vmul.f32 %v2106_v8, %v2078_v12 }
 0xb23   : > { %v2109_v14 = vmul.f32 %v2105_v11, %v2077_v10  ;;  %v2112_v19 = vpack.c.bf16 %v2108_v1, %v2108_v1 }
 0xb24   : > { %v2111_v16 = vmul.f32 %v2107_v23, %v2079_v13  ;;  %v2114_v20 = vpack.c.bf16 %v2110_v15, %v2110_v15 }
 0xb25   : > { %v2113_v17 = vpack.c.bf16 %v2109_v14, %v2109_v14 }
 0xb26   : > { %v2115_v18 = vpack.c.bf16 %v2111_v16, %v2111_v16 }
 0xb27   : > { %2411 = vmatprep.mubr.bf16.mxu1 %v2113_v17 }
 0xb28   : > { %2451 = vmatprep.mubr.bf16.mxu0 %v2115_v18  ;;  %2412 = vmatmul.mubr.bf16.vlgmr.msra.gmra.mxu1 %v2112_v19 }
 0xb29   : > { %2452 = vmatmul.mubr.bf16.vlgmr.msra.gmra.mxu0 %v2114_v20 }
 0xbe8   : > { %v2988_v21 = vpop.f32.mrf.mxu1 }
 0xbe9   : > { %v3010_v22 = vpop.f32.mrf.mxu0 }
 0xbea   : > { %v2989_v25 = vpop.f32.mrf.mxu1 }
 0xbeb   : > { %v2990_v26 = vadd.f32 %v2989_v25, %v2988_v21  ;;  %v3011_v2 = vpop.f32.mrf.mxu0 }
 0xbec   : > { %v2991_v27 = vpop.f32.mrf.mxu1  ;;  %v3012_v29 = vadd.f32 %v3011_v2, %v3010_v22 }
 0xbed   : > { %v2414_v28 = vadd.f32 %v2990_v26, %v2895_v24  ;;  %v3013_v30 = vpop.f32.mrf.mxu0 }
 0xbee   : > { %v2992_v31 = vpop.f32.mrf.mxu1 }
 0xbef   : > { %v2454_v32 = vadd.f32 %v3012_v29, %v2414_v28  ;;  %v3014_v33 = vpop.f32.mrf.mxu0  ;;  %2464 = sbr.rel (%p2928_p3) target bundleno = 3367 (0xd27), region = 124 }
 0xbf1   : > { %v2459_v34 = vadd.f32 %v2454_v32, %v4456_v37 }
 0xbf3   : > { %2460 = vst [vmem:[%s4291_s13] sm:$0xff] %v2459_v34 }
 0xbf4   : > { %2467 = vadd.xlane.f32.xlu0 %v2459_v34  ;;  %v2929_v37 = vld [vmem:[%s4723_s11] ss:$0 sm:$0xff] }
 0xbf5   : > { %v2930_v45 = vld [vmem:[%s4724_s20] ss:$0 sm:$0xff] }
 0xc7d   : > { %v2468_v35 = vpop.xlane.xlu0 %2467 }
 0xc7e   : > { %v2469_v36 = vmul.f32 0.0078125, %v2468_v35 }
 0xc80   : > { %v2470_v38 = vsub.f32 %v2459_v34, %v2469_v36 }
 0xc82   : > { %v2471_v39 = vmul.f32 %v2470_v38, %v2470_v38 }
 0xc84   : > { %2472 = vadd.xlane.f32.xlu0 %v2471_v39 }
 0xd0d   : > { %v2473_v40 = vpop.xlane.xlu0 %2472 }
 0xd0e   : > { %v2474_v41 = vmul.f32 0.0078125, %v2473_v40 }
 0xd10   : > { %v2475_v42 = vadd.f32 1e-05, %v2474_v41 }
 0xd12   : > { %3412 = vrsqrt.f32 %v2475_v42 }
 0xd1f   : > { %v3413_v46 = vpop.eup %3412 }
 0xd20   : > { %v2477_v48 = vmul.f32 %v3413_v46, %v2470_v38 }
 0xd22   : > { %v2484_v49 = vmul.f32 %v2929_v37, %v2477_v48 }
 0xd24   : > { %v2491_v50 = vadd.f32 %v2930_v45, %v2484_v49 }
 0xd26   : > { %2492 = vst [vmem:[%s4291_s13] sm:$0xff] %v2491_v50 }
 0xd27 PF: > { %s4725_s28 = sld [smem:[#allocation32_spill]]  ;;  %s2507_s26 = sshll.u32 %s4291_s13, 4  ;;  %s2508_s26 = int_to_ptr.vmem [resolvable:$true] %s2507_s26 }
 0xd28   : > { %s4726_s15 = sld [smem:[#allocation57_spill]]  ;;  %s2494_s6 = scalar_lea.sflag [#allocation6], %s4218_s12 }
 0xd29   : > { %s3674_s22 = scalar_lea.vmem %s2508_s26, 128  ;;  %s3837_s7 = smov [#allocation19]  }
 0xd2a   : > { %p3675_p0 = scmp.ne.s32.totalorder %s2508_s26, %s3674_s22  ;;  %s3678_s25 = sshll.u32 %s3837_s7, 4  ;;  %s3679_s25 = int_to_ptr.vmem [resolvable:$false] %s3678_s25 }
 0xd2b   : > { %s3680_s30 = scalar_lea.vmem %s3679_s25, 256  ;;  %p3681_p5 = scmp.lt.s32.totalorder %s2508_s26, %s3679_s25 }
 0xd2c   : > { %p3676_p10 = pnand %p3675_p0, %p4131_p1  ;;  %p3682_p9 = scmp.lt.s32.totalorder %s3680_s30, %s3674_s22 }
 0xd2d   : > { %s2932_s10 = sshll.u32 %s4725_s28, 7 }
 0xd2e   : > { %s2505_s16 = scalar_lea.hbm %s4726_s15, %s2932_s10  ;;  %p3677_p8 = pneg %p3676_p10 }
 0xd2f   : > { %p3683_p6 = por %p3682_p9, %p3681_p5 }
 0xd31   : > { %p3684_p12 = pnand %p3683_p6, %p3677_p8 }
 0xd33   : > { %3687 = shalt.err (!%p3684_p12)
}
 0xd34   : > { %s3688_s29 = scalar_lea.hbm %s2505_s16, 128  ;;  %s3692_s19 = scalar_lea.hbm %s4726_s15, 256 }
 0xd35   : > { %p3689_p13 = scmp.ne.s32.totalorder %s2505_s16, %s3688_s29  ;;  %p3693_p4 = scmp.lt.s32.totalorder %s2505_s16, %s4726_s15 }
 0xd36   : > { %p3694_p2 = scmp.lt.s32.totalorder %s3692_s19, %s3688_s29 }
 0xd37   : > { %p3690_p11 = pnand %p3689_p13, %p4131_p1 }
 0xd38   : > { %p3695_p3 = por %p3694_p2, %p3693_p4 }
 0xd39   : > { %p3691_p7 = pneg %p3690_p11 }
 0xd3b   : > { %p3696_p0 = pnand %p3695_p3, %p3691_p7 }
 0xd3d   : > { %3699 = shalt.err (!%p3696_p0)
}
 0xd3e   : > { %3126 = dma.vmem_to_hbm [thread:$0]  (%p4131_p1), %s2508_s26, 128, %s2505_s16, %s2494_s6  }
 0xd3f PF: > { %s4727_s8 = sld [smem:[#allocation29_spill]]  ;;  %p3161_p10 = scmp.ge.s32.totalorder %s3812_s18, 2 }
 0xd40   : > { %s4728_s24 = sld [smem:[#allocation40_spill]] }
 0xd45   : > { %s2519_s5 = sand.u32 1, %s4727_s8  }
 0xd46   : > { %p4729_p8 = scmp.ne.s32.totalorder %s4728_s24, 0  ;;  %s2520_s21 = scalar_lea.sflag [#allocation6], %s2519_s5 }
 0xd48   : > { %p3157_p5 = pnand %p3161_p10, %p4729_p8 }
 0xd4a   : > { %p3158_p9 = pneg %p3157_p5 }
 0xd4c   : > { %3767 = dma.done.wait (%p3158_p9), %s2520_s21, 128  }
 0xd4d   : > { %3769 = vsyncadd (%p3158_p9), %s2520_s21, 4294967168  ;;  %s48_s18 = sadd.s32 1, %s3812_s18   ;;  %s4730_s24 = sld [smem:[#allocation27_spill]] }
 0xd4e   : > { %p45_p6 = scmp.ge.s32.totalorder %s48_s18, 6   ;;  %s4731_s25 = sld [smem:[#allocation28_spill]] }
 0xd4f   : > { %s4732_s5 = sld [smem:[#allocation38_spill]]  ;;  %s4739_s26 = smov %s3788_s27 }
 0xd50   : > { %s4733_s1 = sld [smem:[#allocation30_spill]] }
 0xd51   : > { %s4734_s28 = sld [smem:[#allocation39_spill]] }
 0xd52   : > { %s4735_s29 = sld [smem:[#allocation33_spill]]  ;;  %47 = sbr.rel (!%p45_p6) target bundleno = 45 (0x2d), region = 241 }
 0xd53   : > { %s4736_s30 = sld [smem:[#allocation34_spill]] }
 0xd54   : > { %s4737_s0 = sld [smem:[#allocation36_spill]] }
 0xd55   : > { %s4738_s17 = sld [smem:[#allocation37_spill]] }
 0xd56   : > { %s4740_s27 = smov %s4733_s1 }
 0xd57   :  { %2525 = vsyncpa [#allocation5], 1 }
 0xd58   :  { %2527 = vsyncpa [#allocation5 + $0x1], 1 }
 0xd59   :  { %2528 = vsyncpa [#allocation8], 1 }
 0xd5a   :  { %2530 = vsyncpa [#allocation8 + $0x1], 1 }
 0xd5b   :  { %2531 = vsyncpa [#allocation11], 1 }
 0xd5c   :  { %2533 = vsyncpa [#allocation11 + $0x1], 1 }
 0xd5d   :  { %2534 = vsyncpa [#allocation14], 1 }
 0xd5e   :  { %2536 = vsyncpa [#allocation14 + $0x1], 1 }
 0xd5f   :  { %2537 = vsyncpa [#allocation17], 1 }
 0xd60   :  { %2539 = vsyncpa [#allocation17 + $0x1], 1 }
 0xd61   :  { %2540 = vsyncpa [#allocation6], 1 }
 0xd62   :  { %2542 = vsyncpa [#allocation6 + $0x1], 1 }

</bundles_post_ra>
